<compile_context>
chip_gen: v7x
topology: tpu7x:2x2x1
jax: 0.10.0
libtpu: 0.0.40
codegen_flags: <defaults>
</compile_context>

<pallas_src>
import jax
import jax.numpy as jnp
from jax import lax
from jax.experimental import pallas as pl
from jax.experimental.pallas import tpu as pltpu


def lstm_head_kernel(
    x_ref,            # (B_TILE, T_CHUNK, I)  input slab (original layout, no HBM transpose)
    wx_ref,           # (I, 4H)  fused input->gate weights  [i|f|g|o]
    wh_ref,           # (H, 4H)  fused hidden->gate weights [i|f|g|o]
    b_ref,            # (1, 4H)  fused bias (b_ih + b_hh)
    wo_ref,           # (H, O)   folded head weight  (w1 @ w2)
    bo_ref,           # (1, O)   folded head bias    (b1 @ w2 + b2)
    out_ref,          # (B_TILE, O)
    h_scr, c_scr,     # VMEM (B_TILE, H) f32 — recurrent state, carried across chunks
):
    b_tile, t_chunk, in_sz = x_ref.shape
    hidden = wh_ref.shape[0]
    chunk = pl.program_id(1)

    @pl.when(chunk == 0)
    def _():
        h_scr[...] = jnp.zeros_like(h_scr)
        c_scr[...] = jnp.zeros_like(c_scr)

    # --- Hoisted input projection: one lane-dense (B*T, I) @ (I, 4H) matmul.
    # Kept as a value (no scratch round trip); sliced below with static t.
    x2d = x_ref[...].reshape(b_tile * t_chunk, in_sz)
    xp = jnp.dot(x2d, wx_ref[...], preferred_element_type=jnp.float32) + b_ref[...]
    xp = xp.reshape(b_tile, t_chunk, 4 * hidden)

    # Hoist the recurrent weight read so the (H, 4H) RHS can stay staged in the
    # MXU across the unrolled steps.
    wh = wh_ref[...]

    h = h_scr[...]
    c = c_scr[...]
    # Static Python loop == fully unrolled recurrence with static time indices
    # (T_CHUNK is small here; cap/rechunk if T_CHUNK ever grows past ~32).
    for t in range(t_chunk):
        # (B, 4H) pre-activations: precomputed x-part + recurrent h @ Wh.
        z = xp[:, t, :] + jnp.dot(h, wh, preferred_element_type=jnp.float32)
        # Two full-vreg EUP passes on the lane-dense (B, 128) tile, then cheap
        # 32-lane gate slices — instead of 4 sliced transcendental dispatches.
        sig = jax.nn.sigmoid(z)
        th = jnp.tanh(z)
        i_g = sig[:, 0 * hidden:1 * hidden]
        f_g = sig[:, 1 * hidden:2 * hidden]
        g_g = th[:, 2 * hidden:3 * hidden]
        o_g = sig[:, 3 * hidden:4 * hidden]
        c = f_g * c + i_g * g_g
        h = o_g * jnp.tanh(c)

    h_scr[...] = h
    c_scr[...] = c

    # --- Folded MLP head on the final hidden state (runs once, cold path) ----
    @pl.when(chunk == pl.num_programs(1) - 1)
    def _():
        y = jnp.dot(h, wo_ref[...], preferred_element_type=jnp.float32) + bo_ref[...]
        out_ref[...] = y.astype(out_ref.dtype)


def net_forward(x, params, *, t_chunk=None, b_tile=None):
    """x: (B, T, I) float32. params: dict from make_params (module layout)."""
    B, T, I = x.shape
    H = params["wh"].shape[0]
    H4 = params["wx"].shape[1]
    O = params["w2"].shape[1]

    t_chunk = T if t_chunk is None else t_chunk
    # NOTE(v7x): set b_tile = B // 2 (multiple of 8; pad B first if needed) so
    # the second TensorCore gets a batch slice via the "parallel" axis.
    b_tile = B if b_tile is None else b_tile
    assert T % t_chunk == 0 and B % b_tile == 0
    num_chunks = T // t_chunk
    num_btiles = B // b_tile

    # Fold the two bias-only linear layers into one (H, O) affine at prep time
    # (no nonlinearity between them => identical up to FP rounding).
    wo = jnp.dot(params["w1"], params["w2"])                       # (H, O)
    bo = jnp.dot(params["b1"], params["w2"]) + params["b2"]        # (1, O)

    const = lambda shape: pl.BlockSpec(shape, lambda b, c: (0,) * len(shape))

    return pl.pallas_call(
        lstm_head_kernel,
        out_shape=jax.ShapeDtypeStruct((B, O), jnp.float32),
        grid=(num_btiles, num_chunks),
        in_specs=[
            # Original (B, T, I) layout — no wrapper-side HBM transpose.
            pl.BlockSpec((b_tile, t_chunk, I), lambda b, c: (b, c, 0)),
            const((I, H4)),                 # wx
            const((H, H4)),                 # wh
            const((1, H4)),                 # b
            const((H, O)),                  # folded head weight
            const((1, O)),                  # folded head bias
        ],
        out_specs=pl.BlockSpec((b_tile, O), lambda b, c: (b, 0)),
        scratch_shapes=[
            pltpu.VMEM((b_tile, H), jnp.float32),   # h carry
            pltpu.VMEM((b_tile, H), jnp.float32),   # c carry
        ],
        compiler_params=pltpu.CompilerParams(
            # Batch tiles are independent (v7x megacore can split them); the
            # time-chunk axis carries h/c state and gates the final output
            # write -> must stay innermost and "arbitrary".
            dimension_semantics=("parallel", "arbitrary"),
        ),
    )(x, params["wx"], params["wh"], params["b"], wo, bo)


def make_params(key, input_size, hidden_size, output_size):
    """Synthetic params matching nn.LSTM(num_layers=1) + two nn.Linear layers.

    PyTorch stores weight_ih (4H, I) / weight_hh (4H, H) with gate order
    [i, f, g, o]. Here the fused, transposed forms are used directly:
        wx = weight_ih.T -> (I, 4H),  wh = weight_hh.T -> (H, 4H),
        b  = (bias_ih + bias_hh)[None, :] -> (1, 4H).
    Linear layers are kept unfolded here (module layout); the fold happens in
    net_forward.
    """
    H, I, O = hidden_size, input_size, output_size
    k = jax.random.split(key, 6)
    s = 0.1
    return {
        "wx": (s * jax.random.normal(k[0], (I, 4 * H))).astype(jnp.float32),
        "wh": (s * jax.random.normal(k[1], (H, 4 * H))).astype(jnp.float32),
        "b":  (s * jax.random.normal(k[2], (1, 4 * H))).astype(jnp.float32),
        "w1": (s * jax.random.normal(k[3], (H, 5 * H))).astype(jnp.float32),
        "b1": (s * jax.random.normal(k[4], (1, 5 * H))).astype(jnp.float32),
        "w2": (s * jax.random.normal(k[5], (5 * H, O))).astype(jnp.float32),
        "b2": jnp.zeros((1, O), jnp.float32),
    }


def net_forward_ref(x, params):
    """Pure-JAX reference (unfolded Linear1/Linear2, same math as the module)."""
    B, T, I = x.shape
    H = params["wh"].shape[0]
    h = jnp.zeros((B, H), jnp.float32)
    c = jnp.zeros((B, H), jnp.float32)

    def step(carry, x_t):
        h, c = carry
        z = x_t @ params["wx"] + h @ params["wh"] + params["b"]
        i = jax.nn.sigmoid(z[:, 0 * H:1 * H])
        f = jax.nn.sigmoid(z[:, 1 * H:2 * H])
        g = jnp.tanh(z[:, 2 * H:3 * H])
        o = jax.nn.sigmoid(z[:, 3 * H:4 * H])
        c = f * c + i * g
        h = o * jnp.tanh(c)
        return (h, c), None

    (h, c), _ = lax.scan(step, (h, c), jnp.swapaxes(x, 0, 1))
    y = h @ params["w1"] + params["b1"]
    return y @ params["w2"] + params["b2"]


if __name__ == "__main__":
    # Small shapes consistent with the module's forward pass.
    batch, seq_len, input_size = 8, 8, 16
    hidden_size, output_size = 32, 4        # 4H = 128 (lane-dense gate matmul)

    key = jax.random.PRNGKey(0)
    k_x, k_p = jax.random.split(key)
    x = jax.random.normal(k_x, (batch, seq_len, input_size), dtype=jnp.float32)
    params = make_params(k_p, input_size, hidden_size, output_size)

    y = jax.block_until_ready(net_forward(x, params))
    y_ref = jax.block_until_ready(net_forward_ref(x, params))

    assert y.shape == (batch, output_size)
    # Tolerance covers the Linear1·Linear2 fold (FP rounding only).
    assert jnp.allclose(y, y_ref, atol=1e-4, rtol=1e-3), "mismatch vs reference"

    print("KERNEL_OK")
</pallas_src>

<mosaic_0001>
module attributes {stable_mosaic.version = 11 : i64} {
  func.func @lstm_head_kernel(%arg0: i32, %arg1: i32, %arg2: memref<8x8x16xf32, #tpu.memory_space<vmem>>, %arg3: memref<16x128xf32, #tpu.memory_space<vmem>>, %arg4: memref<32x128xf32, #tpu.memory_space<vmem>>, %arg5: memref<1x128xf32, #tpu.memory_space<vmem>>, %arg6: memref<32x4xf32, #tpu.memory_space<vmem>>, %arg7: memref<1x4xf32, #tpu.memory_space<vmem>>, %arg8: memref<8x4xf32, #tpu.memory_space<vmem>>, %arg9: memref<8x32xf32, #tpu.memory_space<vmem>>, %arg10: memref<8x32xf32, #tpu.memory_space<vmem>>) attributes {dimension_semantics = [#tpu.dimension_semantics<parallel>, #tpu.dimension_semantics<arbitrary>], iteration_bounds = array<i64: 1, 1>, scalar_prefetch = 0 : i64, scratch_operands = 2 : i64, tpu.core_type = #tpu.core_type<tc>, window_params = [{transform_indices = @transform_0, window_bounds = array<i64: 8, 8, 16>}, {pipeline_mode = #tpu.pipeline_mode<synchronous>, transform_indices = @transform_1, window_bounds = array<i64: 16, 128>}, {pipeline_mode = #tpu.pipeline_mode<synchronous>, transform_indices = @transform_2, window_bounds = array<i64: 32, 128>}, {pipeline_mode = #tpu.pipeline_mode<synchronous>, transform_indices = @transform_3, window_bounds = array<i64: 1, 128>}, {pipeline_mode = #tpu.pipeline_mode<synchronous>, transform_indices = @transform_4, window_bounds = array<i64: 32, 4>}, {pipeline_mode = #tpu.pipeline_mode<synchronous>, transform_indices = @transform_5, window_bounds = array<i64: 1, 4>}, {transform_indices = @transform_6, window_bounds = array<i64: 8, 4>}]} {
    %c0_i32 = arith.constant 0 : i32
    %0 = arith.cmpi eq, %arg1, %c0_i32 : i32
    %1 = arith.extui %0 : i1 to i32
    %c0_i32_0 = arith.constant 0 : i32
    %2 = arith.cmpi ne, %1, %c0_i32_0 : i32
    scf.if %2 {
      %cst_35 = arith.constant 0.000000e+00 : f32
      %171 = vector.broadcast %cst_35 : f32 to vector<8x32xf32>
      %c0_36 = arith.constant 0 : index
      %c0_37 = arith.constant 0 : index
      %172 = vector.load %arg9[%c0_36, %c0_37] : memref<8x32xf32, #tpu.memory_space<vmem>>, vector<8x32xf32>
      tpu.vector_store %arg9[%c0_36, %c0_37], %171 {strides = array<i32>} : memref<8x32xf32, #tpu.memory_space<vmem>>, vector<8x32xf32>,
      %cst_38 = arith.constant 0.000000e+00 : f32
      %173 = vector.broadcast %cst_38 : f32 to vector<8x32xf32>
      %c0_39 = arith.constant 0 : index
      %c0_40 = arith.constant 0 : index
      %174 = vector.load %arg10[%c0_39, %c0_40] : memref<8x32xf32, #tpu.memory_space<vmem>>, vector<8x32xf32>
      tpu.vector_store %arg10[%c0_39, %c0_40], %173 {strides = array<i32>} : memref<8x32xf32, #tpu.memory_space<vmem>>, vector<8x32xf32>,
    } else {
    }
    %c0 = arith.constant 0 : index
    %c0_1 = arith.constant 0 : index
    %c0_2 = arith.constant 0 : index
    %3 = vector.load %arg2[%c0, %c0_1, %c0_2] : memref<8x8x16xf32, #tpu.memory_space<vmem>>, vector<8x8x16xf32>
    %4 = vector.shape_cast %3 : vector<8x8x16xf32> to vector<64x16xf32>
    %c0_3 = arith.constant 0 : index
    %c0_4 = arith.constant 0 : index
    %5 = vector.load %arg3[%c0_3, %c0_4] : memref<16x128xf32, #tpu.memory_space<vmem>>, vector<16x128xf32>
    %cst = arith.constant dense<0.000000e+00> : vector<64x128xf32>
    %6 = tpu.matmul %4, %5, %cst {dimension_numbers = #tpu.dot_dimension_numbers<[1], [0], [0], [1], [0, 0, 1, 1], [], []>} : vector<64x16xf32>, vector<16x128xf32>, vector<64x128xf32> -> vector<64x128xf32>
    %c0_5 = arith.constant 0 : index
    %c0_6 = arith.constant 0 : index
    %7 = vector.load %arg5[%c0_5, %c0_6] : memref<1x128xf32, #tpu.memory_space<vmem>>, vector<1x128xf32>
    %8 = vector.broadcast %7 : vector<1x128xf32> to vector<64x128xf32>
    %9 = arith.addf %6, %8 : vector<64x128xf32>
    %10 = vector.shape_cast %9 : vector<64x128xf32> to vector<8x8x128xf32>
    %c0_7 = arith.constant 0 : index
    %c0_8 = arith.constant 0 : index
    %11 = vector.load %arg4[%c0_7, %c0_8] : memref<32x128xf32, #tpu.memory_space<vmem>>, vector<32x128xf32>
    %c0_9 = arith.constant 0 : index
    %c0_10 = arith.constant 0 : index
    %12 = vector.load %arg9[%c0_9, %c0_10] : memref<8x32xf32, #tpu.memory_space<vmem>>, vector<8x32xf32>
    %c0_11 = arith.constant 0 : index
    %c0_12 = arith.constant 0 : index
    %13 = vector.load %arg10[%c0_11, %c0_12] : memref<8x32xf32, #tpu.memory_space<vmem>>, vector<8x32xf32>
    %14 = vector.extract_strided_slice %10 {offsets = [0, 0, 0], sizes = [8, 1, 128], strides = [1, 1, 1]} : vector<8x8x128xf32> to vector<8x1x128xf32>
    %15 = vector.shape_cast %14 : vector<8x1x128xf32> to vector<8x128xf32>
    %cst_13 = arith.constant dense<0.000000e+00> : vector<8x128xf32>
    %16 = tpu.matmul %12, %11, %cst_13 {dimension_numbers = #tpu.dot_dimension_numbers<[1], [0], [0], [1], [0, 0, 1, 1], [], []>} : vector<8x32xf32>, vector<32x128xf32>, vector<8x128xf32> -> vector<8x128xf32>
    %17 = arith.addf %15, %16 : vector<8x128xf32>
    %18 = arith.negf %17 : vector<8x128xf32>
    %19 = math.exp %18 : vector<8x128xf32>
    %cst_14 = arith.constant 1.000000e+00 : f32
    %20 = vector.broadcast %cst_14 : f32 to vector<8x128xf32>
    %21 = arith.addf %20, %19 : vector<8x128xf32>
    %22 = arith.divf %20, %21 : vector<8x128xf32>
    %23 = math.tanh %17 : vector<8x128xf32>
    %24 = vector.extract_strided_slice %22 {offsets = [0, 0], sizes = [8, 32], strides = [1, 1]} : vector<8x128xf32> to vector<8x32xf32>
    %25 = vector.extract_strided_slice %22 {offsets = [0, 32], sizes = [8, 32], strides = [1, 1]} : vector<8x128xf32> to vector<8x32xf32>
    %26 = vector.extract_strided_slice %23 {offsets = [0, 64], sizes = [8, 32], strides = [1, 1]} : vector<8x128xf32> to vector<8x32xf32>
    %27 = vector.extract_strided_slice %22 {offsets = [0, 96], sizes = [8, 32], strides = [1, 1]} : vector<8x128xf32> to vector<8x32xf32>
    %28 = arith.mulf %25, %13 : vector<8x32xf32>
    %29 = arith.mulf %24, %26 : vector<8x32xf32>
    %30 = arith.addf %28, %29 : vector<8x32xf32>
    %31 = math.tanh %30 : vector<8x32xf32>
    %32 = arith.mulf %27, %31 : vector<8x32xf32>
    %33 = vector.extract_strided_slice %10 {offsets = [0, 1, 0], sizes = [8, 1, 128], strides = [1, 1, 1]} : vector<8x8x128xf32> to vector<8x1x128xf32>
    %34 = vector.shape_cast %33 : vector<8x1x128xf32> to vector<8x128xf32>
    %cst_15 = arith.constant dense<0.000000e+00> : vector<8x128xf32>
    %35 = tpu.matmul %32, %11, %cst_15 {dimension_numbers = #tpu.dot_dimension_numbers<[1], [0], [0], [1], [0, 0, 1, 1], [], []>} : vector<8x32xf32>, vector<32x128xf32>, vector<8x128xf32> -> vector<8x128xf32>
    %36 = arith.addf %34, %35 : vector<8x128xf32>
    %37 = arith.negf %36 : vector<8x128xf32>
    %38 = math.exp %37 : vector<8x128xf32>
    %cst_16 = arith.constant 1.000000e+00 : f32
    %39 = vector.broadcast %cst_16 : f32 to vector<8x128xf32>
    %40 = arith.addf %39, %38 : vector<8x128xf32>
    %41 = arith.divf %39, %40 : vector<8x128xf32>
    %42 = math.tanh %36 : vector<8x128xf32>
    %43 = vector.extract_strided_slice %41 {offsets = [0, 0], sizes = [8, 32], strides = [1, 1]} : vector<8x128xf32> to vector<8x32xf32>
    %44 = vector.extract_strided_slice %41 {offsets = [0, 32], sizes = [8, 32], strides = [1, 1]} : vector<8x128xf32> to vector<8x32xf32>
    %45 = vector.extract_strided_slice %42 {offsets = [0, 64], sizes = [8, 32], strides = [1, 1]} : vector<8x128xf32> to vector<8x32xf32>
    %46 = vector.extract_strided_slice %41 {offsets = [0, 96], sizes = [8, 32], strides = [1, 1]} : vector<8x128xf32> to vector<8x32xf32>
    %47 = arith.mulf %44, %30 : vector<8x32xf32>
    %48 = arith.mulf %43, %45 : vector<8x32xf32>
    %49 = arith.addf %47, %48 : vector<8x32xf32>
    %50 = math.tanh %49 : vector<8x32xf32>
    %51 = arith.mulf %46, %50 : vector<8x32xf32>
    %52 = vector.extract_strided_slice %10 {offsets = [0, 2, 0], sizes = [8, 1, 128], strides = [1, 1, 1]} : vector<8x8x128xf32> to vector<8x1x128xf32>
    %53 = vector.shape_cast %52 : vector<8x1x128xf32> to vector<8x128xf32>
    %cst_17 = arith.constant dense<0.000000e+00> : vector<8x128xf32>
    %54 = tpu.matmul %51, %11, %cst_17 {dimension_numbers = #tpu.dot_dimension_numbers<[1], [0], [0], [1], [0, 0, 1, 1], [], []>} : vector<8x32xf32>, vector<32x128xf32>, vector<8x128xf32> -> vector<8x128xf32>
    %55 = arith.addf %53, %54 : vector<8x128xf32>
    %56 = arith.negf %55 : vector<8x128xf32>
    %57 = math.exp %56 : vector<8x128xf32>
    %cst_18 = arith.constant 1.000000e+00 : f32
    %58 = vector.broadcast %cst_18 : f32 to vector<8x128xf32>
    %59 = arith.addf %58, %57 : vector<8x128xf32>
    %60 = arith.divf %58, %59 : vector<8x128xf32>
    %61 = math.tanh %55 : vector<8x128xf32>
    %62 = vector.extract_strided_slice %60 {offsets = [0, 0], sizes = [8, 32], strides = [1, 1]} : vector<8x128xf32> to vector<8x32xf32>
    %63 = vector.extract_strided_slice %60 {offsets = [0, 32], sizes = [8, 32], strides = [1, 1]} : vector<8x128xf32> to vector<8x32xf32>
    %64 = vector.extract_strided_slice %61 {offsets = [0, 64], sizes = [8, 32], strides = [1, 1]} : vector<8x128xf32> to vector<8x32xf32>
    %65 = vector.extract_strided_slice %60 {offsets = [0, 96], sizes = [8, 32], strides = [1, 1]} : vector<8x128xf32> to vector<8x32xf32>
    %66 = arith.mulf %63, %49 : vector<8x32xf32>
    %67 = arith.mulf %62, %64 : vector<8x32xf32>
    %68 = arith.addf %66, %67 : vector<8x32xf32>
    %69 = math.tanh %68 : vector<8x32xf32>
    %70 = arith.mulf %65, %69 : vector<8x32xf32>
    %71 = vector.extract_strided_slice %10 {offsets = [0, 3, 0], sizes = [8, 1, 128], strides = [1, 1, 1]} : vector<8x8x128xf32> to vector<8x1x128xf32>
    %72 = vector.shape_cast %71 : vector<8x1x128xf32> to vector<8x128xf32>
    %cst_19 = arith.constant dense<0.000000e+00> : vector<8x128xf32>
    %73 = tpu.matmul %70, %11, %cst_19 {dimension_numbers = #tpu.dot_dimension_numbers<[1], [0], [0], [1], [0, 0, 1, 1], [], []>} : vector<8x32xf32>, vector<32x128xf32>, vector<8x128xf32> -> vector<8x128xf32>
    %74 = arith.addf %72, %73 : vector<8x128xf32>
    %75 = arith.negf %74 : vector<8x128xf32>
    %76 = math.exp %75 : vector<8x128xf32>
    %cst_20 = arith.constant 1.000000e+00 : f32
    %77 = vector.broadcast %cst_20 : f32 to vector<8x128xf32>
    %78 = arith.addf %77, %76 : vector<8x128xf32>
    %79 = arith.divf %77, %78 : vector<8x128xf32>
    %80 = math.tanh %74 : vector<8x128xf32>
    %81 = vector.extract_strided_slice %79 {offsets = [0, 0], sizes = [8, 32], strides = [1, 1]} : vector<8x128xf32> to vector<8x32xf32>
    %82 = vector.extract_strided_slice %79 {offsets = [0, 32], sizes = [8, 32], strides = [1, 1]} : vector<8x128xf32> to vector<8x32xf32>
    %83 = vector.extract_strided_slice %80 {offsets = [0, 64], sizes = [8, 32], strides = [1, 1]} : vector<8x128xf32> to vector<8x32xf32>
    %84 = vector.extract_strided_slice %79 {offsets = [0, 96], sizes = [8, 32], strides = [1, 1]} : vector<8x128xf32> to vector<8x32xf32>
    %85 = arith.mulf %82, %68 : vector<8x32xf32>
    %86 = arith.mulf %81, %83 : vector<8x32xf32>
    %87 = arith.addf %85, %86 : vector<8x32xf32>
    %88 = math.tanh %87 : vector<8x32xf32>
    %89 = arith.mulf %84, %88 : vector<8x32xf32>
    %90 = vector.extract_strided_slice %10 {offsets = [0, 4, 0], sizes = [8, 1, 128], strides = [1, 1, 1]} : vector<8x8x128xf32> to vector<8x1x128xf32>
    %91 = vector.shape_cast %90 : vector<8x1x128xf32> to vector<8x128xf32>
    %cst_21 = arith.constant dense<0.000000e+00> : vector<8x128xf32>
    %92 = tpu.matmul %89, %11, %cst_21 {dimension_numbers = #tpu.dot_dimension_numbers<[1], [0], [0], [1], [0, 0, 1, 1], [], []>} : vector<8x32xf32>, vector<32x128xf32>, vector<8x128xf32> -> vector<8x128xf32>
    %93 = arith.addf %91, %92 : vector<8x128xf32>
    %94 = arith.negf %93 : vector<8x128xf32>
    %95 = math.exp %94 : vector<8x128xf32>
    %cst_22 = arith.constant 1.000000e+00 : f32
    %96 = vector.broadcast %cst_22 : f32 to vector<8x128xf32>
    %97 = arith.addf %96, %95 : vector<8x128xf32>
    %98 = arith.divf %96, %97 : vector<8x128xf32>
    %99 = math.tanh %93 : vector<8x128xf32>
    %100 = vector.extract_strided_slice %98 {offsets = [0, 0], sizes = [8, 32], strides = [1, 1]} : vector<8x128xf32> to vector<8x32xf32>
    %101 = vector.extract_strided_slice %98 {offsets = [0, 32], sizes = [8, 32], strides = [1, 1]} : vector<8x128xf32> to vector<8x32xf32>
    %102 = vector.extract_strided_slice %99 {offsets = [0, 64], sizes = [8, 32], strides = [1, 1]} : vector<8x128xf32> to vector<8x32xf32>
    %103 = vector.extract_strided_slice %98 {offsets = [0, 96], sizes = [8, 32], strides = [1, 1]} : vector<8x128xf32> to vector<8x32xf32>
    %104 = arith.mulf %101, %87 : vector<8x32xf32>
    %105 = arith.mulf %100, %102 : vector<8x32xf32>
    %106 = arith.addf %104, %105 : vector<8x32xf32>
    %107 = math.tanh %106 : vector<8x32xf32>
    %108 = arith.mulf %103, %107 : vector<8x32xf32>
    %109 = vector.extract_strided_slice %10 {offsets = [0, 5, 0], sizes = [8, 1, 128], strides = [1, 1, 1]} : vector<8x8x128xf32> to vector<8x1x128xf32>
    %110 = vector.shape_cast %109 : vector<8x1x128xf32> to vector<8x128xf32>
    %cst_23 = arith.constant dense<0.000000e+00> : vector<8x128xf32>
    %111 = tpu.matmul %108, %11, %cst_23 {dimension_numbers = #tpu.dot_dimension_numbers<[1], [0], [0], [1], [0, 0, 1, 1], [], []>} : vector<8x32xf32>, vector<32x128xf32>, vector<8x128xf32> -> vector<8x128xf32>
    %112 = arith.addf %110, %111 : vector<8x128xf32>
    %113 = arith.negf %112 : vector<8x128xf32>
    %114 = math.exp %113 : vector<8x128xf32>
    %cst_24 = arith.constant 1.000000e+00 : f32
    %115 = vector.broadcast %cst_24 : f32 to vector<8x128xf32>
    %116 = arith.addf %115, %114 : vector<8x128xf32>
    %117 = arith.divf %115, %116 : vector<8x128xf32>
    %118 = math.tanh %112 : vector<8x128xf32>
    %119 = vector.extract_strided_slice %117 {offsets = [0, 0], sizes = [8, 32], strides = [1, 1]} : vector<8x128xf32> to vector<8x32xf32>
    %120 = vector.extract_strided_slice %117 {offsets = [0, 32], sizes = [8, 32], strides = [1, 1]} : vector<8x128xf32> to vector<8x32xf32>
    %121 = vector.extract_strided_slice %118 {offsets = [0, 64], sizes = [8, 32], strides = [1, 1]} : vector<8x128xf32> to vector<8x32xf32>
    %122 = vector.extract_strided_slice %117 {offsets = [0, 96], sizes = [8, 32], strides = [1, 1]} : vector<8x128xf32> to vector<8x32xf32>
    %123 = arith.mulf %120, %106 : vector<8x32xf32>
    %124 = arith.mulf %119, %121 : vector<8x32xf32>
    %125 = arith.addf %123, %124 : vector<8x32xf32>
    %126 = math.tanh %125 : vector<8x32xf32>
    %127 = arith.mulf %122, %126 : vector<8x32xf32>
    %128 = vector.extract_strided_slice %10 {offsets = [0, 6, 0], sizes = [8, 1, 128], strides = [1, 1, 1]} : vector<8x8x128xf32> to vector<8x1x128xf32>
    %129 = vector.shape_cast %128 : vector<8x1x128xf32> to vector<8x128xf32>
    %cst_25 = arith.constant dense<0.000000e+00> : vector<8x128xf32>
    %130 = tpu.matmul %127, %11, %cst_25 {dimension_numbers = #tpu.dot_dimension_numbers<[1], [0], [0], [1], [0, 0, 1, 1], [], []>} : vector<8x32xf32>, vector<32x128xf32>, vector<8x128xf32> -> vector<8x128xf32>
    %131 = arith.addf %129, %130 : vector<8x128xf32>
    %132 = arith.negf %131 : vector<8x128xf32>
    %133 = math.exp %132 : vector<8x128xf32>
    %cst_26 = arith.constant 1.000000e+00 : f32
    %134 = vector.broadcast %cst_26 : f32 to vector<8x128xf32>
    %135 = arith.addf %134, %133 : vector<8x128xf32>
    %136 = arith.divf %134, %135 : vector<8x128xf32>
    %137 = math.tanh %131 : vector<8x128xf32>
    %138 = vector.extract_strided_slice %136 {offsets = [0, 0], sizes = [8, 32], strides = [1, 1]} : vector<8x128xf32> to vector<8x32xf32>
    %139 = vector.extract_strided_slice %136 {offsets = [0, 32], sizes = [8, 32], strides = [1, 1]} : vector<8x128xf32> to vector<8x32xf32>
    %140 = vector.extract_strided_slice %137 {offsets = [0, 64], sizes = [8, 32], strides = [1, 1]} : vector<8x128xf32> to vector<8x32xf32>
    %141 = vector.extract_strided_slice %136 {offsets = [0, 96], sizes = [8, 32], strides = [1, 1]} : vector<8x128xf32> to vector<8x32xf32>
    %142 = arith.mulf %139, %125 : vector<8x32xf32>
    %143 = arith.mulf %138, %140 : vector<8x32xf32>
    %144 = arith.addf %142, %143 : vector<8x32xf32>
    %145 = math.tanh %144 : vector<8x32xf32>
    %146 = arith.mulf %141, %145 : vector<8x32xf32>
    %147 = vector.extract_strided_slice %10 {offsets = [0, 7, 0], sizes = [8, 1, 128], strides = [1, 1, 1]} : vector<8x8x128xf32> to vector<8x1x128xf32>
    %148 = vector.shape_cast %147 : vector<8x1x128xf32> to vector<8x128xf32>
    %cst_27 = arith.constant dense<0.000000e+00> : vector<8x128xf32>
    %149 = tpu.matmul %146, %11, %cst_27 {dimension_numbers = #tpu.dot_dimension_numbers<[1], [0], [0], [1], [0, 0, 1, 1], [], []>} : vector<8x32xf32>, vector<32x128xf32>, vector<8x128xf32> -> vector<8x128xf32>
    %150 = arith.addf %148, %149 : vector<8x128xf32>
    %151 = arith.negf %150 : vector<8x128xf32>
    %152 = math.exp %151 : vector<8x128xf32>
    %cst_28 = arith.constant 1.000000e+00 : f32
    %153 = vector.broadcast %cst_28 : f32 to vector<8x128xf32>
    %154 = arith.addf %153, %152 : vector<8x128xf32>
    %155 = arith.divf %153, %154 : vector<8x128xf32>
    %156 = math.tanh %150 : vector<8x128xf32>
    %157 = vector.extract_strided_slice %155 {offsets = [0, 0], sizes = [8, 32], strides = [1, 1]} : vector<8x128xf32> to vector<8x32xf32>
    %158 = vector.extract_strided_slice %155 {offsets = [0, 32], sizes = [8, 32], strides = [1, 1]} : vector<8x128xf32> to vector<8x32xf32>
    %159 = vector.extract_strided_slice %156 {offsets = [0, 64], sizes = [8, 32], strides = [1, 1]} : vector<8x128xf32> to vector<8x32xf32>
    %160 = vector.extract_strided_slice %155 {offsets = [0, 96], sizes = [8, 32], strides = [1, 1]} : vector<8x128xf32> to vector<8x32xf32>
    %161 = arith.mulf %158, %144 : vector<8x32xf32>
    %162 = arith.mulf %157, %159 : vector<8x32xf32>
    %163 = arith.addf %161, %162 : vector<8x32xf32>
    %164 = math.tanh %163 : vector<8x32xf32>
    %165 = arith.mulf %160, %164 : vector<8x32xf32>
    %c0_29 = arith.constant 0 : index
    %c0_30 = arith.constant 0 : index
    %166 = vector.load %arg9[%c0_29, %c0_30] : memref<8x32xf32, #tpu.memory_space<vmem>>, vector<8x32xf32>
    tpu.vector_store %arg9[%c0_29, %c0_30], %165 {strides = array<i32>} : memref<8x32xf32, #tpu.memory_space<vmem>>, vector<8x32xf32>,
    %c0_31 = arith.constant 0 : index
    %c0_32 = arith.constant 0 : index
    %167 = vector.load %arg10[%c0_31, %c0_32] : memref<8x32xf32, #tpu.memory_space<vmem>>, vector<8x32xf32>
    tpu.vector_store %arg10[%c0_31, %c0_32], %163 {strides = array<i32>} : memref<8x32xf32, #tpu.memory_space<vmem>>, vector<8x32xf32>,
    %c0_i32_33 = arith.constant 0 : i32
    %168 = arith.cmpi eq, %arg1, %c0_i32_33 : i32
    %169 = arith.extui %168 : i1 to i32
    %c0_i32_34 = arith.constant 0 : i32
    %170 = arith.cmpi ne, %169, %c0_i32_34 : i32
    scf.if %170 {
      %c0_35 = arith.constant 0 : index
      %c0_36 = arith.constant 0 : index
      %171 = vector.load %arg6[%c0_35, %c0_36] : memref<32x4xf32, #tpu.memory_space<vmem>>, vector<32x4xf32>
      %cst_37 = arith.constant dense<0.000000e+00> : vector<8x4xf32>
      %172 = tpu.matmul %165, %171, %cst_37 {dimension_numbers = #tpu.dot_dimension_numbers<[1], [0], [0], [1], [0, 0, 1, 1], [], []>} : vector<8x32xf32>, vector<32x4xf32>, vector<8x4xf32> -> vector<8x4xf32>
      %c0_38 = arith.constant 0 : index
      %c0_39 = arith.constant 0 : index
      %173 = vector.load %arg7[%c0_38, %c0_39] : memref<1x4xf32, #tpu.memory_space<vmem>>, vector<1x4xf32>
      %174 = vector.broadcast %173 : vector<1x4xf32> to vector<8x4xf32>
      %175 = arith.addf %172, %174 : vector<8x4xf32>
      %c0_40 = arith.constant 0 : index
      %c0_41 = arith.constant 0 : index
      %176 = vector.load %arg8[%c0_40, %c0_41] : memref<8x4xf32, #tpu.memory_space<vmem>>, vector<8x4xf32>
      tpu.vector_store %arg8[%c0_40, %c0_41], %175 {strides = array<i32>} : memref<8x4xf32, #tpu.memory_space<vmem>>, vector<8x4xf32>,
    } else {
    }
    return
  }
  func.func @transform_0(%arg0: i32, %arg1: i32) -> (i32, i32, i32) {
    %c0_i32 = arith.constant 0 : i32
    %c0_i32_0 = arith.constant 0 : i32
    return %arg0, %arg1, %c0_i32 : i32, i32, i32
  }
  func.func @transform_1(%arg0: i32, %arg1: i32) -> (i32, i32) {
    %c0_i32 = arith.constant 0 : i32
    %c0_i32_0 = arith.constant 0 : i32
    %c0_i32_1 = arith.constant 0 : i32
    return %c0_i32, %c0_i32_0 : i32, i32
  }
  func.func @transform_2(%arg0: i32, %arg1: i32) -> (i32, i32) {
    %c0_i32 = arith.constant 0 : i32
    %c0_i32_0 = arith.constant 0 : i32
    %c0_i32_1 = arith.constant 0 : i32
    return %c0_i32, %c0_i32_0 : i32, i32
  }
  func.func @transform_3(%arg0: i32, %arg1: i32) -> (i32, i32) {
    %c0_i32 = arith.constant 0 : i32
    %c0_i32_0 = arith.constant 0 : i32
    %c0_i32_1 = arith.constant 0 : i32
    return %c0_i32, %c0_i32_0 : i32, i32
  }
  func.func @transform_4(%arg0: i32, %arg1: i32) -> (i32, i32) {
    %c0_i32 = arith.constant 0 : i32
    %c0_i32_0 = arith.constant 0 : i32
    %c0_i32_1 = arith.constant 0 : i32
    return %c0_i32, %c0_i32_0 : i32, i32
  }
  func.func @transform_5(%arg0: i32, %arg1: i32) -> (i32, i32) {
    %c0_i32 = arith.constant 0 : i32
    %c0_i32_0 = arith.constant 0 : i32
    %c0_i32_1 = arith.constant 0 : i32
    return %c0_i32, %c0_i32_0 : i32, i32
  }
  func.func @transform_6(%arg0: i32, %arg1: i32) -> (i32, i32) {
    %c0_i32 = arith.constant 0 : i32
    %c0_i32_0 = arith.constant 0 : i32
    return %arg0, %c0_i32 : i32, i32
  }
}

</mosaic_0001>

<bundles_post_ra>
// kernel: tpu_custom_call.1
= control target key start
LH: loop header
LB: loop body
LE: loop exit
PB: predicated region body
PF: predicated region fallthrough
CT: control target
= control target key end

     0   :  { %11 = vsyncpa [#allocation5], 0  ;;  %s5041_s0 = inlined_call_operand.hbm [shape: f32[8,8,16], index: 0, kind: input, shape index: {}]   ;;  %s5042_s1 = inlined_call_operand.hbm [shape: f32[16,128], index: 1, kind: input, shape index: {}]   ;;  %s5043_s2 = inlined_call_operand.vmem [shape: f32[32,128], index: 2, kind: input, shape index: {}]   ;;  %s5044_s3 = inlined_call_operand.vmem [shape: f32[1,128], index: 3, kind: input, shape index: {}]   ;;  %s5045_s4 = inlined_call_operand.vmem [shape: f32[32,4], index: 4, kind: input, shape index: {}]   ;;  %s5046_s5 = inlined_call_operand.vmem [shape: f32[1,4], index: 5, kind: input, shape index: {}]   ;;  %s5047_s6 = inlined_call_operand.vmem [shape: f32[8,4], index: 6, kind: output, shape index: {}]  }
   0x1   :  { %12 = vsyncpa [#allocation7], 0  ;;  %s3943_s21 = smov [#allocation4]   ;;  %s3895_s25 = scalar_lea.hbm %s5041_s0, 1024 }
   0x2   :  { %s18_s22 = sshll.u32 %s3943_s21, 4  ;;  %p3896_p0 = scmp.ne.s32.totalorder %s5041_s0, %s3895_s25  ;;  %s19_s22 = int_to_ptr.vmem [resolvable:$true] %s18_s22 }
   0x3   :  { %p3899_p1 = scmp.lt.u32.totalorder %s3895_s25, %s5041_s0 }
   0x5   :  { %p3901_p2 = pnand %p3899_p1, %p3896_p0 }
   0x7   :  { %3904 = shalt.err (!%p3901_p2)
}
   0x8   :  { %s3905_s30 = scalar_lea.vmem %s19_s22, 1024  ;;  %p3910_p4 = scmp.lt.s32.totalorder %s19_s22, %s19_s22 }
   0x9   :  { %p3906_p3 = scmp.ne.s32.totalorder %s19_s22, %s3905_s30  ;;  %p3911_p5 = scmp.lt.s32.totalorder %s3905_s30, %s3905_s30 }
   0xb   :  { %p3912_p6 = por %p3911_p5, %p3910_p4 }
   0xd   :  { %p3913_p7 = pnand %p3912_p6, %p3906_p3 }
   0xf   :  { %3916 = shalt.err (!%p3913_p7)
}
  0x10   :  { %s3944_s7 = smov 128   ;;  %s3945_s8 = smov 8  }
  0x11   :  { %24 = dma.hbm_to_vmem [thread:$0]  %s5041_s0, 1024, %s19_s22, [#allocation5], %s3944_s7, %s3944_s7, %s3945_s8  }
  0x12   :  { %s3946_s11 = smov [#allocation6]   ;;  %s3917_s15 = scalar_lea.hbm %s5042_s1, 256 }
  0x13   :  { %s30_s12 = sshll.u32 %s3946_s11, 4  ;;  %p3918_p8 = scmp.ne.s32.totalorder %s5042_s1, %s3917_s15  ;;  %s31_s12 = int_to_ptr.vmem [resolvable:$true] %s30_s12 }
  0x14   :  { %p3921_p9 = scmp.lt.u32.totalorder %s3917_s15, %s5042_s1 }
  0x16   :  { %p3923_p10 = pnand %p3921_p9, %p3918_p8 }
  0x18   :  { %3926 = shalt.err (!%p3923_p10)
}
  0x19   :  { %s3927_s20 = scalar_lea.vmem %s31_s12, 256  ;;  %p3932_p12 = scmp.lt.s32.totalorder %s31_s12, %s31_s12 }
  0x1a   :  { %p3928_p11 = scmp.ne.s32.totalorder %s31_s12, %s3927_s20  ;;  %p3933_p13 = scmp.lt.s32.totalorder %s3927_s20, %s3927_s20 }
  0x1c   :  { %p3934_p0 = por %p3933_p13, %p3932_p12 }
  0x1e   :  { %p3935_p1 = pnand %p3934_p0, %p3928_p11 }
  0x20   :  { %3938 = shalt.err (!%p3935_p1)
}
  0x21   :  { %36 = dma.hbm_to_vmem [thread:$0]  %s5042_s1, 256, %s31_s12, [#allocation7], %s3944_s7, %s3944_s7, %s3945_s8  }
  0x22   :  { %3939 = dma.done.wait [#allocation5], 1024  }
  0x23   :  { %3940 = vsyncadd [#allocation5], 4294966272 }
  0x24   :  { %3941 = dma.done.wait [#allocation7], 256  }
  0x25   :  { %3942 = vsyncadd [#allocation7], 4294967040  ;;  %v3947_v0 = vmov 0.0|0.0   ;;  %vm3948_vm0 = vmmov 0   ;;  %v3949_v1 = vmov 0.0   ;;  %vm55_vm1 = vcmask 261120  }
  0x26   :  { %3319 = vmatprep.subr.bf16.mxu1 %v3947_v0  ;;  %3224 = vmatprep.mubr.msk.f32.mxu1 %vm3948_vm0, %v3949_v1  ;;  %56 = vst.msk [vmem:[#allocation2] sm:$0xff] %vm55_vm1, %v3949_v1  ;;  %57 = vst.msk [vmem:[#allocation3] sm:$0xff] %vm55_vm1, %v3949_v1  ;;  %vm75_vm2 = vcmask 130048   ;;  %v66_v2 = vld [vmem:[#allocation6] sm:$0xff]  ;;  %v67_v3 = vld [vmem:[#allocation6 + $0x8] sm:$0xff]  ;;  %s3951_s30 = smov 32  }
  0x27   :  { %v205_v4 = vld [vmem:[%s5043_s2] sm:$0xff]  ;;  %v3315_v5 = vpack.c.bf16 %v67_v3, %v66_v2  ;;  %v206_v6 = vld [vmem:[%s5043_s2 + $0x8] sm:$0xff]  ;;  %v58_v7 = vld [vmem:[#allocation4] sm:$0xff]  ;;  %vm542_vm3 = vcmask 1041409   ;;  %vm545_vm4 = vcmask 1042434   ;;  %vm548_vm5 = vcmask 1043459  }
  0x28   :  { %v4025_v8 = vpack.c.bf16 %v206_v6, %v205_v4  ;;  %3204 = vmatprep.mubr.msk.f32.mxu0 %vm75_vm2, %v58_v7  ;;  %v207_v9 = vld [vmem:[%s5043_s2 + $0x10] sm:$0xff]  ;;  %v208_v10 = vld [vmem:[%s5043_s2 + $0x18] sm:$0xff]  ;;  %v60_v13 = vld [vmem:[#allocation4 + $0x10] sm:$0xff]  ;;  %vm551_vm6 = vcmask 1044484   ;;  %vm554_vm7 = vcmask 1045509   ;;  %vm557_vm8 = vcmask 1046534  }
  0x29   :  { %3316 = vmatprep.subr.bf16.mxu0 %v3315_v5  ;;  %v59_v11 = vld [vmem:[#allocation4 + $0x8] sm:$0xff]  ;;  %v4035_v12 = vpack.c.bf16 %v208_v10, %v207_v9  ;;  %v61_v15 = vld [vmem:[#allocation4 + $0x18] sm:$0xff]  ;;  %v62_v16 = vld [vmem:[#allocation4 + $0x20] sm:$0xff]  ;;  %vm560_vm9 = vcmask 1047559   ;;  %s3952_s15 = smov 96   ;;  %vm2919_vm10 = vcmask 261127  }
  0x2a   :  { %3321 = vmatpush3.bf16.msra.mxu1 %v4025_v8  ;;  %3318 = vmatpush3.bf16.msra.mxu0 %v3315_v5  ;;  %v63_v17 = vld [vmem:[#allocation4 + $0x28] sm:$0xff]  ;;  %v64_v18 = vld [vmem:[#allocation4 + $0x30] sm:$0xff]  ;;  %v65_v19 = vld [vmem:[#allocation4 + $0x38] sm:$0xff]  ;;  %vm2921_vm11 = vcmask 260096   ;;  %vm3054_vm12 = vcmask 31744  }
  0x2b   :  { %3322 = vmatprep.subr.bf16.mxu1 %v3947_v0  ;;  %3331 = vmatprep.subr.bf16.mxu0 %v3947_v0  ;;  %v3062_v21 = vld [vmem:[%s5044_s3] ss:$0 sm:$0xff]  ;;  %s3950_s3 = smov 64  }
  0x2d   :  { %3205 = vmatmul.mubr.msk.f32.vlgmr.msra.gmra.mrb[0].mxu0 %vm75_vm2, %v59_v11  ;;  %v209_v14 = vld [vmem:[#allocation2] sm:$0xff]  ;;  %v210_v60 = vld [vmem:[#allocation3] sm:$0xff] }
  0x2e   :  { %3324 = vmatpush3.bf16.msra.mxu1 %v4035_v12  ;;  %3207 = vmatprep.mubr.msk.f32.mxu0 %vm75_vm2, %v60_v13  ;;  %v367_v62 = vrot.slane %v210_v60, 2  ;;  %v366_v2 = vrot.slane %v210_v60, 1  ;;  %v368_v3 = vrot.slane %v210_v60, 3  ;;  %v369_v4 = vrot.slane %v210_v60, 4 }
  0x2f   :  { %3325 = vmatprep.subr.bf16.mxu1 %v3947_v0  ;;  %3333 = vmatpush3.bf16.msra.mxu0 %v4025_v8  ;;  %v371_v5 = vrot.slane %v210_v60, 6  ;;  %v370_v6 = vrot.slane %v210_v60, 5  ;;  %v372_v7 = vrot.slane %v210_v60, 7 }
  0x30   :  { %3334 = vmatprep.subr.bf16.mxu0 %v3947_v0 }
  0x31   :  { %3225 = vmatmul.mubr.msk.f32.vlgmr.msra.gmra.mrb[0].mxu1 %vm55_vm1, %v209_v14  ;;  %3208 = vmatmul.mubr.msk.f32.gmra.mrb[2].mxu0 %vm75_vm2, %v61_v15 }
  0x32   :  { %3210 = vmatprep.mubr.msk.f32.mxu0 %vm75_vm2, %v62_v16  ;;  %3327 = vmatpush3.bf16.msra.mxu1 %v4025_v8 }
  0x33   :  { %3328 = vmatprep.subr.bf16.mxu1 %v3947_v0  ;;  %3235 = vmatprep.mubr.msk.f32.mxu1 %vm3948_vm0, %v3949_v1 }
  0x34   :  { %3336 = vmatpush3.bf16.msra.mxu0 %v4035_v12 }
  0x35   :  { %3211 = vmatmul.mubr.msk.f32.gmra.mrb[4].mxu0 %vm75_vm2, %v63_v17  ;;  %3343 = vmatprep.subr.bf16.mxu0 %v3947_v0 }
  0x36   :  { %3213 = vmatprep.mubr.msk.f32.mxu0 %vm75_vm2, %v64_v18  ;;  %3330 = vmatpush3.bf16.msra.mxu1 %v4035_v12 }
  0x37   :  { %3337 = vmatprep.subr.bf16.mxu1 %v3947_v0 }
  0x39   :  { %3214 = vmatmul.mubr.msk.f32.gmra.mrb[6].mxu0 %vm75_vm2, %v65_v19 }
  0x3a   :  { %3246 = vmatprep.mubr.msk.f32.mxu0 %vm3948_vm0, %v3949_v1 }
 0x100   :  { %v3206_v20 = vpop.f32.mrb[0].mxu0 }
 0x101   :  { %v166_v22 = vpop.f32.mrb[1].mxu0  ;;  %v4068_v30 = vadd.f32 %v3206_v20, %v3062_v21 }
 0x102   :  { %v4064_v23 = vadd.f32 %v3062_v21, %v166_v22 }
 0x104   :  { %v281_v24 = vpop.f32.mrb[0].mxu1  ;;  %v3209_v25 = vpop.f32.mrb[2].mxu0 }
 0x105   :  { %v288_v26 = vrot.slane %v281_v24, 3  ;;  %v3226_v27 = vpop.f32.mrb[1].mxu1  ;;  %v176_v28 = vpop.f32.mrb[3].mxu0  ;;  %v4066_v29 = vadd.f32 %v3209_v25, %v3062_v21  ;;  %v4071_v31 = vadd.f32 %v281_v24, %v4064_v23  ;;  %v286_v32 = vrot.slane %v281_v24, 1 }
 0x106   :  { %v4073_v33 = vadd.f32 %v3062_v21, %v176_v28  ;;  %v287_v38 = vrot.slane %v281_v24, 2  ;;  %v290_v40 = vrot.slane %v281_v24, 5  ;;  %v289_v45 = vrot.slane %v281_v24, 4 }
 0x107   :  { %v4076_v35 = vadd.f32 %v288_v26, %v4066_v29  ;;  %3383 = vtanh.f32 %v4071_v31  ;;  %v302_v37 = vadd.f32 %v286_v32, %v4068_v30  ;;  %v292_v48 = vrot.slane %v281_v24, 7 }
 0x108   :  { %v3212_v34 = vpop.f32.mrb[4].mxu0  ;;  %v303_v43 = vadd.f32 %v287_v38, %v4073_v33  ;;  %v291_v53 = vrot.slane %v281_v24, 6  ;;  %v3072_v9 = vmul.f32 -1.442695, %v4071_v31 }
 0x109   :  { %v186_v36 = vpop.f32.mrb[5].mxu0  ;;  %v4080_v39 = vadd.f32 %v3212_v34, %v3062_v21  ;;  %3385 = vtanh.f32 %v4076_v35  ;;  %v3073_v10 = vmul.f32 -1.442695, %v302_v37  ;;  %v3075_v11 = vmul.f32 -1.442695, %v4076_v35 }
 0x10a   :  { %v4083_v41 = vadd.f32 %v3062_v21, %v186_v36  ;;  %3387 = vtanh.f32 %v302_v37  ;;  %v3074_v13 = vmul.f32 -1.442695, %v303_v43 }
 0x10b   :  { %v306_v47 = vadd.f32 %v290_v40, %v4080_v39  ;;  %3389 = vtanh.f32 %v303_v43 }
 0x10c   :  { %v3215_v42 = vpop.f32.mrb[6].mxu0  ;;  %v305_v49 = vadd.f32 %v289_v45, %v4083_v41 }
 0x10d   :  { %v196_v44 = vpop.f32.mrb[7].mxu0  ;;  %v4086_v46 = vadd.f32 %v3215_v42, %v3062_v21  ;;  %3391 = vtanh.f32 %v306_v47  ;;  %v3077_v14 = vmul.f32 -1.442695, %v306_v47 }
 0x10e   :  { %v4090_v50 = vadd.f32 %v3062_v21, %v196_v44  ;;  %3393 = vtanh.f32 %v305_v49  ;;  %v3076_v15 = vmul.f32 -1.442695, %v305_v49 }
 0x10f   :  { %v308_v51 = vadd.f32 %v292_v48, %v4086_v46 }
 0x110   :  { %v307_v55 = vadd.f32 %v291_v53, %v4090_v50 }
 0x111   :  { %v3384_v52 = vpop.eup %3383  ;;  %3395 = vtanh.f32 %v308_v51  ;;  %v3079_v17 = vmul.f32 -1.442695, %v308_v51 }
 0x112   :  { %413 = vrot.lane.b32.xlu1 %v3384_v52, %s3950_s3  ;;  %3397 = vtanh.f32 %v307_v55  ;;  %v3078_v18 = vmul.f32 -1.442695, %v307_v55 }
 0x113   :  { %v3386_v54 = vpop.eup %3385  ;;  %3399 = vpow2.f32 %v3072_v9 }
 0x114   :  { %v3388_v56 = vpop.eup %3387  ;;  %3401 = vpow2.f32 %v3073_v10 }
 0x115   :  { %415 = vrot.lane.b32.xlu0 %v3388_v56, %s3950_s3  ;;  %v3390_v57 = vpop.eup %3389  ;;  %3403 = vpow2.f32 %v3075_v11 }
 0x116   :  { %419 = vrot.lane.b32.xlu1 %v3386_v54, %s3950_s3  ;;  %3405 = vpow2.f32 %v3074_v13 }
 0x117   :  { %v3392_v58 = vpop.eup %3391  ;;  %3407 = vpow2.f32 %v3077_v14 }
 0x118   :  { %v3394_v59 = vpop.eup %3393  ;;  %3409 = vpow2.f32 %v3076_v15 }
 0x119   :  { %417 = vrot.lane.b32.xlu0 %v3390_v57, %s3950_s3  ;;  %3411 = vpow2.f32 %v3079_v17 }
 0x11a   :  { %423 = vrot.lane.b32.xlu1 %v3392_v58, %s3950_s3  ;;  %3413 = vpow2.f32 %v3078_v18 }
 0x11b   :  { %v3396_v61 = vpop.eup %3395 }
 0x11c   :  { %v3398_v63 = vpop.eup %3397 }
 0x11d   :  { %421 = vrot.lane.b32.xlu0 %v3394_v59, %s3950_s3  ;;  %v3400_v16 = vpop.eup %3399 }
 0x11e   :  { %427 = vrot.lane.b32.xlu1 %v3396_v61, %s3950_s3  ;;  %v3402_v19 = vpop.eup %3401  ;;  %v333_v20 = vadd.f32 1.0, %v3400_v16 }
 0x11f   :  { %v3404_v21 = vpop.eup %3403  ;;  %v334_v22 = vadd.f32 1.0, %v3402_v19 }
 0x120   :  { %3415 = vrcp.f32 %v333_v20  ;;  %v336_v24 = vadd.f32 1.0, %v3404_v21  ;;  %v3406_v25 = vpop.eup %3405 }
 0x121   :  { %425 = vrot.lane.b32.xlu0 %v3398_v63, %s3950_s3  ;;  %v3408_v26 = vpop.eup %3407  ;;  %3417 = vrcp.f32 %v334_v22  ;;  %v335_v27 = vadd.f32 1.0, %v3406_v25 }
 0x122   :  { %377 = vrot.lane.b32.xlu1 %v367_v62, %s3951_s30  ;;  %3419 = vrcp.f32 %v336_v24  ;;  %v338_v28 = vadd.f32 1.0, %v3408_v26  ;;  %v3410_v31 = vpop.eup %3409 }
 0x123   :  { %v3412_v32 = vpop.eup %3411  ;;  %3421 = vrcp.f32 %v335_v27  ;;  %v337_v35 = vadd.f32 1.0, %v3410_v31 }
 0x124   :  { %v3414_v34 = vpop.eup %3413  ;;  %3423 = vrcp.f32 %v338_v28  ;;  %v340_v44 = vadd.f32 1.0, %v3412_v32 }
 0x125   :  { %375 = vrot.lane.b32.xlu0 %v366_v2, %s3951_s30  ;;  %v339_v40 = vadd.f32 1.0, %v3414_v34  ;;  %3425 = vrcp.f32 %v337_v35 }
 0x126   :  { %379 = vrot.lane.b32.xlu1 %v368_v3, %s3951_s30 }
 0x127   :  { %3427 = vrcp.f32 %v339_v40 }
 0x128   :  { %3429 = vrcp.f32 %v340_v44 }
 0x129   :  { %373 = vrot.lane.b32.xlu0 %v210_v60, %s3951_s30 }
 0x12a   :  { %381 = vrot.lane.b32.xlu1 %v369_v4, %s3951_s30  ;;  %v4112_v36 = vpop.eup %3415 }
 0x12b   :  { %v4115_v42 = vpop.eup %3417 }
 0x12c   :  { %v4118_v45 = vpop.eup %3419 }
 0x12d   :  { %385 = vrot.lane.b32.xlu0 %v371_v5, %s3951_s30  ;;  %v4124_v52 = vpop.eup %3421 }
 0x12e   :  { %383 = vrot.lane.b32.xlu1 %v370_v6, %s3951_s30  ;;  %v4126_v53 = vpop.eup %3423 }
 0x12f   :  { %v4132_v58 = vpop.eup %3425 }
 0x131   :  { %387 = vrot.lane.b32.xlu0 %v372_v7, %s3951_s30  ;;  %v4135_v61 = vpop.eup %3427 }
 0x132   :  { %v4138_v63 = vpop.eup %3429 }
 0x184   :  { %v414_v37 = vpop.permute.xlu1 %413 }
 0x185   :  { %v437_v38 = vmul.f32 %v4112_v36, %v414_v37 }
 0x187   :  { %v416_v43 = vpop.permute.xlu0 %415  ;;  %453 = vrot.lane.b32.xlu0 %v437_v38, %s3951_s30 }
 0x188   :  { %v420_v47 = vpop.permute.xlu1 %419  ;;  %v438_v48 = vmul.f32 %v4115_v42, %v416_v43 }
 0x189   :  { %v440_v49 = vmul.f32 %v4118_v45, %v420_v47 }
 0x18b   :  { %v418_v51 = vpop.permute.xlu0 %417  ;;  %459 = vrot.lane.b32.xlu1 %v440_v49, %s3951_s30  ;;  %455 = vrot.lane.b32.xlu0 %v438_v48, %s3951_s30 }
 0x18c   :  { %v439_v54 = vmul.f32 %v4124_v52, %v418_v51  ;;  %v424_v55 = vpop.permute.xlu1 %423 }
 0x18d   :  { %v442_v56 = vmul.f32 %v4126_v53, %v424_v55 }
 0x18f   :  { %v422_v57 = vpop.permute.xlu0 %421  ;;  %457 = vrot.lane.b32.xlu0 %v439_v54, %s3951_s30  ;;  %463 = vrot.lane.b32.xlu1 %v442_v56, %s3951_s30 }
 0x190   :  { %v441_v59 = vmul.f32 %v4132_v58, %v422_v57  ;;  %v428_v60 = vpop.permute.xlu1 %427 }
 0x191   :  { %v444_v3 = vmul.f32 %v4138_v63, %v428_v60 }
 0x193   :  { %v426_v62 = vpop.permute.xlu0 %425  ;;  %461 = vrot.lane.b32.xlu1 %v441_v59, %s3951_s30 }
 0x194   :  { %v443_v2 = vmul.f32 %v4135_v61, %v426_v62  ;;  %v378_v5 = vpop.permute.xlu1 %377 }
 0x195   :  { %v399_v24 = vmul.f32 %v4124_v52, %v378_v5 }
 0x196   :  { %465 = vrot.lane.b32.xlu0 %v443_v2, %s3951_s30 }
 0x197   :  { %467 = vrot.lane.b32.xlu1 %v444_v3, %s3951_s30  ;;  %v376_v4 = vpop.permute.xlu0 %375 }
 0x198   :  { %v380_v7 = vpop.permute.xlu1 %379  ;;  %v398_v17 = vmul.f32 %v4115_v42, %v376_v4 }
 0x199   :  { %v400_v18 = vmul.f32 %v4118_v45, %v380_v7 }
 0x19b   :  { %v374_v6 = vpop.permute.xlu0 %373 }
 0x19c   :  { %v382_v10 = vpop.permute.xlu1 %381  ;;  %v397_v13 = vmul.f32 %v4112_v36, %v374_v6 }
 0x19d   :  { %v401_v32 = vmul.f32 %v4132_v58, %v382_v10 }
 0x19f   :  { %v386_v9 = vpop.permute.xlu0 %385 }
 0x1a0   :  { %v384_v14 = vpop.permute.xlu1 %383  ;;  %v403_v38 = vmul.f32 %v4135_v61, %v386_v9 }
 0x1a1   :  { %v402_v26 = vmul.f32 %v4126_v53, %v384_v14 }
 0x1a3   :  { %v388_v11 = vpop.permute.xlu0 %387 }
 0x1a4   :  { %v404_v40 = vmul.f32 %v4138_v63, %v388_v11 }
 0x1f9   :  { %v454_v15 = vpop.permute.xlu0 %453 }
 0x1fa   :  { %v4145_v16 = vadd.f32 %v454_v15, %v397_v13 }
 0x1fc   :  { %3431 = vtanh.f32 %v4145_v16 }
 0x1fd   :  { %v460_v19 = vpop.permute.xlu1 %459  ;;  %v456_v20 = vpop.permute.xlu0 %455 }
 0x1fe   :  { %v4150_v21 = vadd.f32 %v460_v19, %v400_v18  ;;  %v4152_v22 = vadd.f32 %v456_v20, %v398_v17 }
 0x200   :  { %3433 = vtanh.f32 %v4150_v21 }
 0x201   :  { %3435 = vtanh.f32 %v4152_v22  ;;  %v458_v25 = vpop.permute.xlu0 %457  ;;  %v464_v27 = vpop.permute.xlu1 %463 }
 0x202   :  { %v4158_v28 = vadd.f32 %v458_v25, %v399_v24  ;;  %v4160_v31 = vadd.f32 %v464_v27, %v402_v26 }
 0x204   :  { %3437 = vtanh.f32 %v4158_v28 }
 0x205   :  { %v462_v35 = vpop.permute.xlu1 %461  ;;  %3439 = vtanh.f32 %v4160_v31 }
 0x206   :  { %v3432_v34 = vpop.eup %3431  ;;  %v4164_v37 = vadd.f32 %v462_v35, %v401_v32 }
 0x207   :  { %501 = vrot.lane.b32.xlu0 %v3432_v34, %s3950_s3 }
 0x208   :  { %3441 = vtanh.f32 %v4164_v37  ;;  %v466_v43 = vpop.permute.xlu0 %465 }
 0x209   :  { %v4171_v47 = vadd.f32 %v466_v43, %v403_v38  ;;  %v468_v48 = vpop.permute.xlu1 %467 }
 0x20a   :  { %v3434_v44 = vpop.eup %3433  ;;  %v4173_v51 = vadd.f32 %v468_v48, %v404_v40 }
 0x20b   :  { %v3436_v49 = vpop.eup %3435  ;;  %507 = vrot.lane.b32.xlu1 %v3434_v44, %s3950_s3  ;;  %3443 = vtanh.f32 %v4171_v47 }
 0x20c   :  { %503 = vrot.lane.b32.xlu0 %v3436_v49, %s3950_s3  ;;  %3445 = vtanh.f32 %v4173_v51 }
 0x20e   :  { %v3438_v54 = vpop.eup %3437 }
 0x20f   :  { %505 = vrot.lane.b32.xlu1 %v3438_v54, %s3950_s3  ;;  %v3440_v55 = vpop.eup %3439 }
 0x212   :  { %v3442_v56 = vpop.eup %3441 }
 0x213   :  { %511 = vrot.lane.b32.xlu1 %v3440_v55, %s3950_s3  ;;  %509 = vrot.lane.b32.xlu0 %v3442_v56, %s3950_s3 }
 0x215   :  { %v3444_v57 = vpop.eup %3443 }
 0x216   :  { %v3446_v59 = vpop.eup %3445 }
 0x217   :  { %515 = vrot.lane.b32.xlu1 %v3446_v59, %s3950_s3  ;;  %513 = vrot.lane.b32.xlu0 %v3444_v57, %s3950_s3 }
 0x279   :  { %v502_v60 = vpop.permute.xlu0 %501 }
 0x27a   :  { %v525_v7 = vmul.f32 %v4112_v36, %v502_v60 }
 0x27d   :  { %v508_v62 = vpop.permute.xlu1 %507 }
 0x27e   :  { %v504_v2 = vpop.permute.xlu0 %503  ;;  %v528_v9 = vmul.f32 %v4118_v45, %v508_v62 }
 0x27f   :  { %v526_v3 = vmul.f32 %v4115_v42, %v504_v2 }
 0x280   :  { %v547_v18 = vrot.slane %v528_v9, 5 }
 0x281   :  { %v506_v4 = vpop.permute.xlu1 %505  ;;  %v541_v5 = vrot.slane %v526_v3, 7 }
 0x282   :  { %v527_v6 = vmul.f32 %v4124_v52, %v506_v4 }
 0x283   :  { %v543_v13 = vsel %vm542_vm3, %v541_v5, %v525_v7 }
 0x284   :  { %v544_v10 = vrot.slane %v527_v6, 6 }
 0x285   :  { %v512_v11 = vpop.permute.xlu1 %511  ;;  %v510_v15 = vpop.permute.xlu0 %509 }
 0x286   :  { %v530_v14 = vmul.f32 %v4126_v53, %v512_v11  ;;  %v546_v17 = vsel %vm545_vm4, %v544_v10, %v543_v13  ;;  %v529_v42 = vmul.f32 %v4132_v58, %v510_v15 }
 0x287   :  { %v549_v36 = vsel %vm548_vm5, %v547_v18, %v546_v17 }
 0x288   :  { %v550_v52 = vrot.slane %v529_v42, 4  ;;  %v553_v19 = vrot.slane %v530_v14, 3 }
 0x289   :  { %v516_v45 = vpop.permute.xlu1 %515  ;;  %v514_v20 = vpop.permute.xlu0 %513 }
 0x28a   :  { %v552_v24 = vsel %vm551_vm6, %v550_v52, %v549_v36  ;;  %v532_v25 = vmul.f32 %v4138_v63, %v516_v45  ;;  %v531_v53 = vmul.f32 %v4135_v61, %v514_v20 }
 0x28b   :  { %v555_v58 = vsel %vm554_vm7, %v553_v19, %v552_v24 }
 0x28c   :  { %v559_v26 = vrot.slane %v532_v25, 1  ;;  %v556_v27 = vrot.slane %v531_v53, 2 }
 0x28e   :  { %v558_v32 = vsel %vm557_vm8, %v556_v27, %v555_v58 }
 0x28f   :  { %v561_v34 = vsel %vm560_vm9, %v559_v26, %v558_v32 }
 0x290   :  { %562 = vrot.lane.b32.xlu0 %v561_v34, %s3951_s30 }
 0x302   :  { %v563_v35 = vpop.permute.xlu0 %562 }
 0x303   :  { %3236 = vmatmul.mubr.msk.f32.vlgmr.msra.gmra.mrb[2].mxu1 %vm55_vm1, %v563_v35 }
 0x304   :  { %3339 = vmatpush3.bf16.msra.mxu1 %v4025_v8  ;;  %3257 = vmatprep.mubr.msk.f32.mxu1 %vm3948_vm0, %v3949_v1 }
 0x305   :  { %3340 = vmatprep.subr.bf16.mxu1 %v3947_v0 }
 0x308   :  { %3342 = vmatpush3.bf16.msra.mxu1 %v4035_v12 }
 0x309   :  { %3349 = vmatprep.subr.bf16.mxu1 %v3947_v0 }
 0x3d6   :  { %v632_v61 = vpop.f32.mrb[2].mxu1 }
 0x3d7   :  { %v3237_v63 = vpop.f32.mrb[3].mxu1  ;;  %v638_v38 = vrot.slane %v632_v61, 1  ;;  %v637_v40 = vrot.slane %v632_v61, 7  ;;  %v653_v43 = vadd.f32 %v632_v61, %v4068_v30  ;;  %v639_v44 = vrot.slane %v632_v61, 2 }
 0x3d8   :  { %v640_v49 = vrot.slane %v632_v61, 3  ;;  %v641_v55 = vrot.slane %v632_v61, 4  ;;  %v642_v57 = vrot.slane %v632_v61, 5  ;;  %v643_v60 = vrot.slane %v632_v61, 6 }
 0x3d9   :  { %v654_v48 = vadd.f32 %v638_v38, %v4073_v33  ;;  %v652_v54 = vadd.f32 %v637_v40, %v4064_v23  ;;  %3447 = vtanh.f32 %v653_v43  ;;  %v655_v56 = vadd.f32 %v639_v44, %v4066_v29 }
 0x3da   :  { %v656_v59 = vadd.f32 %v640_v49, %v4083_v41  ;;  %v657_v62 = vadd.f32 %v641_v55, %v4080_v39  ;;  %v658_v2 = vadd.f32 %v642_v57, %v4090_v50  ;;  %v659_v3 = vadd.f32 %v643_v60, %v4086_v46 }
 0x3db   :  { %3449 = vtanh.f32 %v654_v48  ;;  %v3082_v14 = vmul.f32 -1.442695, %v653_v43  ;;  %v3083_v15 = vmul.f32 -1.442695, %v654_v48  ;;  %v3081_v17 = vmul.f32 -1.442695, %v652_v54 }
 0x3dc   :  { %3451 = vtanh.f32 %v652_v54  ;;  %v3084_v42 = vmul.f32 -1.442695, %v655_v56  ;;  %v3085_v18 = vmul.f32 -1.442695, %v656_v59  ;;  %v3086_v52 = vmul.f32 -1.442695, %v657_v62 }
 0x3dd   :  { %3453 = vtanh.f32 %v655_v56  ;;  %v3087_v19 = vmul.f32 -1.442695, %v658_v2  ;;  %v3088_v36 = vmul.f32 -1.442695, %v659_v3 }
 0x3de   :  { %3455 = vtanh.f32 %v656_v59 }
 0x3df   :  { %3457 = vtanh.f32 %v657_v62 }
 0x3e0   :  { %3459 = vtanh.f32 %v658_v2 }
 0x3e1   :  { %3461 = vtanh.f32 %v659_v3 }
 0x3e2   :  { %3463 = vpow2.f32 %v3082_v14 }
 0x3e3   :  { %v3448_v4 = vpop.eup %3447  ;;  %3465 = vpow2.f32 %v3083_v15 }
 0x3e4   :  { %758 = vrot.lane.b32.xlu1 %v3448_v4, %s3950_s3  ;;  %3467 = vpow2.f32 %v3081_v17 }
 0x3e5   :  { %v3450_v5 = vpop.eup %3449  ;;  %3469 = vpow2.f32 %v3084_v42 }
 0x3e6   :  { %760 = vrot.lane.b32.xlu0 %v3450_v5, %s3950_s3  ;;  %v3452_v6 = vpop.eup %3451  ;;  %3471 = vpow2.f32 %v3085_v18  ;;  %v725_v18 = vrot.slane %v4152_v22, 7 }
 0x3e7   :  { %v3454_v7 = vpop.eup %3453  ;;  %3473 = vpow2.f32 %v3086_v52  ;;  %v726_v52 = vrot.slane %v4158_v28, 7 }
 0x3e8   :  { %756 = vrot.lane.b32.xlu1 %v3452_v6, %s3950_s3  ;;  %v3456_v9 = vpop.eup %3455  ;;  %3475 = vpow2.f32 %v3087_v19 }
 0x3e9   :  { %v3458_v10 = vpop.eup %3457  ;;  %3477 = vpow2.f32 %v3088_v36 }
 0x3ea   :  { %762 = vrot.lane.b32.xlu0 %v3454_v7, %s3950_s3  ;;  %v3460_v11 = vpop.eup %3459 }
 0x3eb   :  { %v3462_v13 = vpop.eup %3461 }
 0x3ec   :  { %764 = vrot.lane.b32.xlu1 %v3456_v9, %s3950_s3  ;;  %v3464_v45 = vpop.eup %3463 }
 0x3ed   :  { %v3466_v20 = vpop.eup %3465  ;;  %v685_v24 = vadd.f32 1.0, %v3464_v45 }
 0x3ee   :  { %766 = vrot.lane.b32.xlu0 %v3458_v10, %s3950_s3  ;;  %v3468_v25 = vpop.eup %3467  ;;  %v686_v53 = vadd.f32 1.0, %v3466_v20  ;;  %v724_v20 = vrot.slane %v4145_v16, 7 }
 0x3ef   :  { %v3470_v26 = vpop.eup %3469  ;;  %3479 = vrcp.f32 %v685_v24  ;;  %v684_v27 = vadd.f32 1.0, %v3468_v25 }
 0x3f0   :  { %768 = vrot.lane.b32.xlu1 %v3460_v11, %s3950_s3  ;;  %v3472_v58 = vpop.eup %3471  ;;  %3481 = vrcp.f32 %v686_v53  ;;  %v687_v32 = vadd.f32 1.0, %v3470_v26  ;;  %v727_v53 = vrot.slane %v4150_v21, 7 }
 0x3f1   :  { %v3474_v34 = vpop.eup %3473  ;;  %3483 = vrcp.f32 %v684_v27  ;;  %v688_v35 = vadd.f32 1.0, %v3472_v58  ;;  %v728_v58 = vrot.slane %v4164_v37, 7 }
 0x3f2   :  { %770 = vrot.lane.b32.xlu0 %v3462_v13, %s3950_s3  ;;  %v3476_v61 = vpop.eup %3475  ;;  %3485 = vrcp.f32 %v687_v32  ;;  %v689_v63 = vadd.f32 1.0, %v3474_v34  ;;  %v729_v34 = vrot.slane %v4160_v31, 7 }
 0x3f3   :  { %v3478_v38 = vpop.eup %3477  ;;  %3487 = vrcp.f32 %v688_v35  ;;  %v690_v40 = vadd.f32 1.0, %v3476_v61 }
 0x3f4   :  { %3489 = vrcp.f32 %v689_v63  ;;  %v691_v43 = vadd.f32 1.0, %v3478_v38  ;;  %v730_v38 = vrot.slane %v4171_v47, 7 }
 0x3f5   :  { %3491 = vrcp.f32 %v690_v40 }
 0x3f6   :  { %3493 = vrcp.f32 %v691_v43  ;;  %v731_v43 = vrot.slane %v4173_v51, 7 }
 0x3f9   :  { %v4223_v44 = vpop.eup %3479 }
 0x3fa   :  { %v4225_v49 = vpop.eup %3481  ;;  %v741_v19 = vmul.f32 %v4223_v44, %v725_v18 }
 0x3fb   :  { %v4230_v57 = vpop.eup %3483  ;;  %v742_v45 = vmul.f32 %v4225_v49, %v726_v52 }
 0x3fc   :  { %v4233_v60 = vpop.eup %3485  ;;  %v740_v22 = vmul.f32 %v4230_v57, %v724_v20 }
 0x3fd   :  { %v4238_v4 = vpop.eup %3487  ;;  %v743_v27 = vmul.f32 %v4233_v60, %v727_v53 }
 0x3fe   :  { %v4241_v6 = vpop.eup %3489  ;;  %v744_v21 = vmul.f32 %v4238_v4, %v728_v58 }
 0x3ff   :  { %v4246_v11 = vpop.eup %3491  ;;  %v745_v63 = vmul.f32 %v4241_v6, %v729_v34 }
 0x400   :  { %v4249_v14 = vpop.eup %3493  ;;  %v746_v31 = vmul.f32 %v4246_v11, %v730_v38 }
 0x456   :  { %v759_v48 = vpop.permute.xlu1 %758 }
 0x457   :  { %v781_v54 = vmul.f32 %v4223_v44, %v759_v48 }
 0x458   :  { %v761_v55 = vpop.permute.xlu0 %760 }
 0x459   :  { %v782_v56 = vmul.f32 %v4225_v49, %v761_v55  ;;  %798 = vrot.lane.b32.xlu1 %v781_v54, %s3951_s30  ;;  %v747_v55 = vmul.f32 %v4249_v14, %v731_v43 }
 0x45a   :  { %v757_v59 = vpop.permute.xlu1 %756 }
 0x45b   :  { %800 = vrot.lane.b32.xlu0 %v782_v56, %s3951_s30  ;;  %v780_v62 = vmul.f32 %v4230_v57, %v757_v59 }
 0x45c   :  { %v763_v2 = vpop.permute.xlu0 %762 }
 0x45d   :  { %v783_v3 = vmul.f32 %v4233_v60, %v763_v2  ;;  %796 = vrot.lane.b32.xlu1 %v780_v62, %s3951_s30 }
 0x45e   :  { %v765_v5 = vpop.permute.xlu1 %764 }
 0x45f   :  { %802 = vrot.lane.b32.xlu0 %v783_v3, %s3951_s30  ;;  %v784_v7 = vmul.f32 %v4238_v4, %v765_v5 }
 0x460   :  { %v767_v9 = vpop.permute.xlu0 %766 }
 0x461   :  { %v785_v10 = vmul.f32 %v4241_v6, %v767_v9  ;;  %804 = vrot.lane.b32.xlu1 %v784_v7, %s3951_s30 }
 0x462   :  { %v769_v13 = vpop.permute.xlu1 %768 }
 0x463   :  { %806 = vrot.lane.b32.xlu0 %v785_v10, %s3951_s30  ;;  %v786_v15 = vmul.f32 %v4246_v11, %v769_v13 }
 0x464   :  { %v771_v17 = vpop.permute.xlu0 %770 }
 0x465   :  { %v787_v42 = vmul.f32 %v4249_v14, %v771_v17  ;;  %808 = vrot.lane.b32.xlu1 %v786_v15, %s3951_s30 }
 0x467   :  { %810 = vrot.lane.b32.xlu0 %v787_v42, %s3951_s30 }
 0x4cb   :  { %v799_v36 = vpop.permute.xlu1 %798 }
 0x4cc   :  { %v4260_v24 = vadd.f32 %v799_v36, %v741_v19 }
 0x4cd   :  { %v801_v25 = vpop.permute.xlu0 %800 }
 0x4ce   :  { %v4263_v26 = vadd.f32 %v801_v25, %v742_v45  ;;  %3495 = vtanh.f32 %v4260_v24 }
 0x4cf   :  { %v797_v28 = vpop.permute.xlu1 %796 }
 0x4d0   :  { %3497 = vtanh.f32 %v4263_v26  ;;  %v4270_v32 = vadd.f32 %v797_v28, %v740_v22 }
 0x4d1   :  { %v803_v16 = vpop.permute.xlu0 %802 }
 0x4d2   :  { %v4273_v35 = vadd.f32 %v803_v16, %v743_v27  ;;  %3499 = vtanh.f32 %v4270_v32 }
 0x4d3   :  { %v805_v61 = vpop.permute.xlu1 %804 }
 0x4d4   :  { %3501 = vtanh.f32 %v4273_v35  ;;  %v4280_v40 = vadd.f32 %v805_v61, %v744_v21 }
 0x4d5   :  { %v807_v37 = vpop.permute.xlu0 %806 }
 0x4d6   :  { %v4283_v48 = vadd.f32 %v807_v37, %v745_v63  ;;  %3503 = vtanh.f32 %v4280_v40 }
 0x4d7   :  { %v809_v54 = vpop.permute.xlu1 %808 }
 0x4d8   :  { %3505 = vtanh.f32 %v4283_v48  ;;  %v3496_v56 = vpop.eup %3495  ;;  %v4289_v59 = vadd.f32 %v809_v54, %v746_v31 }
 0x4d9   :  { %v811_v47 = vpop.permute.xlu0 %810  ;;  %846 = vrot.lane.b32.xlu1 %v3496_v56, %s3950_s3 }
 0x4da   :  { %v3498_v62 = vpop.eup %3497  ;;  %v4291_v2 = vadd.f32 %v811_v47, %v747_v55  ;;  %3507 = vtanh.f32 %v4289_v59 }
 0x4db   :  { %848 = vrot.lane.b32.xlu0 %v3498_v62, %s3950_s3 }
 0x4dc   :  { %3509 = vtanh.f32 %v4291_v2  ;;  %v3500_v51 = vpop.eup %3499 }
 0x4dd   :  { %844 = vrot.lane.b32.xlu1 %v3500_v51, %s3950_s3 }
 0x4de   :  { %v3502_v3 = vpop.eup %3501 }
 0x4df   :  { %850 = vrot.lane.b32.xlu0 %v3502_v3, %s3950_s3 }
 0x4e0   :  { %v3504_v5 = vpop.eup %3503 }
 0x4e1   :  { %852 = vrot.lane.b32.xlu1 %v3504_v5, %s3950_s3 }
 0x4e2   :  { %v3506_v7 = vpop.eup %3505 }
 0x4e3   :  { %854 = vrot.lane.b32.xlu0 %v3506_v7, %s3950_s3 }
 0x4e4   :  { %v3508_v9 = vpop.eup %3507 }
 0x4e5   :  { %856 = vrot.lane.b32.xlu1 %v3508_v9, %s3950_s3 }
 0x4e6   :  { %v3510_v10 = vpop.eup %3509 }
 0x4e7   :  { %858 = vrot.lane.b32.xlu0 %v3510_v10, %s3950_s3 }
 0x54b   :  { %v847_v13 = vpop.permute.xlu1 %846 }
 0x54c   :  { %v869_v36 = vmul.f32 %v4223_v44, %v847_v13 }
 0x54d   :  { %v849_v15 = vpop.permute.xlu0 %848 }
 0x54e   :  { %v870_v17 = vmul.f32 %v4225_v49, %v849_v15 }
 0x54f   :  { %v845_v42 = vpop.permute.xlu1 %844 }
 0x550   :  { %v868_v18 = vmul.f32 %v4230_v57, %v845_v42  ;;  %v886_v20 = vrot.slane %v870_v17, 7 }
 0x551   :  { %v851_v52 = vpop.permute.xlu0 %850 }
 0x552   :  { %v871_v19 = vmul.f32 %v4233_v60, %v851_v52  ;;  %v884_v45 = vrot.slane %v868_v18, 1 }
 0x553   :  { %v853_v53 = vpop.permute.xlu1 %852 }
 0x554   :  { %v888_v25 = vrot.slane %v871_v19, 6  ;;  %v885_v22 = vsel %vm542_vm3, %v869_v36, %v884_v45  ;;  %v872_v28 = vmul.f32 %v4238_v4, %v853_v53 }
 0x555   :  { %v855_v27 = vpop.permute.xlu0 %854  ;;  %v887_v58 = vsel %vm545_vm4, %v886_v20, %v885_v22 }
 0x556   :  { %v873_v49 = vmul.f32 %v4241_v6, %v855_v27  ;;  %v889_v57 = vsel %vm548_vm5, %v888_v25, %v887_v58  ;;  %v890_v16 = vrot.slane %v872_v28, 5 }
 0x557   :  { %v857_v60 = vpop.permute.xlu1 %856 }
 0x558   :  { %v892_v34 = vrot.slane %v873_v49, 4  ;;  %v891_v44 = vsel %vm551_vm6, %v890_v16, %v889_v57  ;;  %v874_v21 = vmul.f32 %v4246_v11, %v857_v60 }
 0x559   :  { %v859_v61 = vpop.permute.xlu0 %858 }
 0x55a   :  { %v875_v63 = vmul.f32 %v4249_v14, %v859_v61  ;;  %v893_v38 = vsel %vm554_vm7, %v892_v34, %v891_v44  ;;  %v894_v4 = vrot.slane %v874_v21, 3 }
 0x55c   :  { %v896_v37 = vrot.slane %v875_v63, 2  ;;  %v895_v43 = vsel %vm557_vm8, %v894_v4, %v893_v38 }
 0x55e   :  { %v897_v6 = vsel %vm560_vm9, %v896_v37, %v895_v43 }
 0x55f   :  { %898 = vrot.lane.b32.xlu1 %v897_v6, %s3951_s30 }
 0x5d1   :  { %v899_v31 = vpop.permute.xlu1 %898 }
 0x5d2   :  { %3247 = vmatmul.mubr.msk.f32.vlgmr.msra.gmra.mrb[8].mxu0 %vm55_vm1, %v899_v31 }
 0x5d3   :  { %3345 = vmatpush3.bf16.msra.mxu0 %v4025_v8  ;;  %3268 = vmatprep.mubr.msk.f32.mxu0 %vm3948_vm0, %v3949_v1 }
 0x5d4   :  { %3346 = vmatprep.subr.bf16.mxu0 %v3947_v0 }
 0x5d7   :  { %3348 = vmatpush3.bf16.msra.mxu0 %v4035_v12 }
 0x5d8   :  { %3355 = vmatprep.subr.bf16.mxu0 %v3947_v0 }
 0x6a5   :  { %v968_v11 = vpop.f32.mrb[8].mxu0 }
 0x6a6   :  { %v973_v14 = vrot.slane %v968_v11, 6  ;;  %v3248_v54 = vpop.f32.mrb[9].mxu0  ;;  %v975_v56 = vrot.slane %v968_v11, 1  ;;  %v974_v47 = vrot.slane %v968_v11, 7  ;;  %v990_v62 = vadd.f32 %v968_v11, %v4073_v33 }
 0x6a7   :  { %v976_v51 = vrot.slane %v968_v11, 2  ;;  %v977_v7 = vrot.slane %v968_v11, 3  ;;  %v978_v10 = vrot.slane %v968_v11, 4  ;;  %v979_v15 = vrot.slane %v968_v11, 5 }
 0x6a8   :  { %v988_v55 = vadd.f32 %v973_v14, %v4064_v23  ;;  %v991_v3 = vadd.f32 %v975_v56, %v4066_v29  ;;  %v989_v9 = vadd.f32 %v974_v47, %v4068_v30  ;;  %v3092_v28 = vmul.f32 -1.442695, %v990_v62 }
 0x6a9   :  { %v992_v13 = vadd.f32 %v976_v51, %v4083_v41  ;;  %v993_v17 = vadd.f32 %v977_v7, %v4080_v39  ;;  %v994_v42 = vadd.f32 %v978_v10, %v4090_v50  ;;  %v995_v18 = vadd.f32 %v979_v15, %v4086_v46 }
 0x6aa   :  { %3511 = vtanh.f32 %v988_v55  ;;  %v3090_v22 = vmul.f32 -1.442695, %v988_v55  ;;  %v3093_v27 = vmul.f32 -1.442695, %v991_v3  ;;  %v3091_v49 = vmul.f32 -1.442695, %v989_v9 }
 0x6ab   :  { %3513 = vtanh.f32 %v990_v62  ;;  %v3094_v57 = vmul.f32 -1.442695, %v992_v13  ;;  %v3095_v34 = vmul.f32 -1.442695, %v993_v17  ;;  %v3096_v60 = vmul.f32 -1.442695, %v994_v42 }
 0x6ac   :  { %3515 = vtanh.f32 %v991_v3  ;;  %v3097_v44 = vmul.f32 -1.442695, %v995_v18 }
 0x6ad   :  { %3517 = vtanh.f32 %v989_v9 }
 0x6ae   :  { %3519 = vtanh.f32 %v992_v13 }
 0x6af   :  { %3521 = vtanh.f32 %v993_v17 }
 0x6b0   :  { %3523 = vtanh.f32 %v994_v42 }
 0x6b1   :  { %3525 = vtanh.f32 %v995_v18 }
 0x6b2   :  { %3527 = vpow2.f32 %v3090_v22 }
 0x6b3   :  { %3529 = vpow2.f32 %v3092_v28 }
 0x6b4   :  { %v3512_v5 = vpop.eup %3511  ;;  %3531 = vpow2.f32 %v3093_v27 }
 0x6b5   :  { %1092 = vrot.lane.b32.xlu0 %v3512_v5, %s3950_s3  ;;  %v3514_v52 = vpop.eup %3513  ;;  %3533 = vpow2.f32 %v3091_v49  ;;  %v1060_v49 = vrot.slane %v4270_v32, 7 }
 0x6b6   :  { %v3516_v19 = vpop.eup %3515  ;;  %1096 = vrot.lane.b32.xlu1 %v3514_v52, %s3950_s3  ;;  %3535 = vpow2.f32 %v3094_v57 }
 0x6b7   :  { %v3518_v36 = vpop.eup %3517 }
 0x6b8   :  { %v3520_v45 = vpop.eup %3519 }
 0x6b9   :  { %1098 = vrot.lane.b32.xlu0 %v3516_v19, %s3950_s3  ;;  %v3522_v20 = vpop.eup %3521 }
 0x6ba   :  { %1094 = vrot.lane.b32.xlu1 %v3518_v36, %s3950_s3  ;;  %v3524_v25 = vpop.eup %3523 }
 0x6bb   :  { %v3526_v53 = vpop.eup %3525 }
 0x6bc   :  { %v3528_v58 = vpop.eup %3527 }
 0x6bd   :  { %1100 = vrot.lane.b32.xlu0 %v3520_v45, %s3950_s3  ;;  %v1020_v16 = vadd.f32 1.0, %v3528_v58  ;;  %v3530_v21 = vpop.eup %3529 }
 0x6be   :  { %1102 = vrot.lane.b32.xlu1 %v3522_v20, %s3950_s3  ;;  %v3532_v61 = vpop.eup %3531  ;;  %v1022_v63 = vadd.f32 1.0, %v3530_v21 }
 0x6bf   :  { %3537 = vrcp.f32 %v1020_v16  ;;  %v3534_v38 = vpop.eup %3533  ;;  %v1023_v4 = vadd.f32 1.0, %v3532_v61 }
 0x6c0   :  { %3539 = vpow2.f32 %v3095_v34  ;;  %v3536_v37 = vpop.eup %3535  ;;  %v1021_v31 = vadd.f32 1.0, %v3534_v38  ;;  %v1061_v38 = vrot.slane %v4260_v24, 7  ;;  %v1065_v24 = vrot.slane %v4283_v48, 7 }
 0x6c1   :  { %1104 = vrot.lane.b32.xlu0 %v3524_v25, %s3950_s3  ;;  %3541 = vpow2.f32 %v3096_v60  ;;  %v1024_v54 = vadd.f32 1.0, %v3536_v37  ;;  %v1062_v60 = vrot.slane %v4263_v26, 7  ;;  %v1064_v37 = vrot.slane %v4280_v40, 7 }
 0x6c2   :  { %1106 = vrot.lane.b32.xlu1 %v3526_v53, %s3950_s3  ;;  %3543 = vpow2.f32 %v3097_v44  ;;  %v1063_v44 = vrot.slane %v4273_v35, 7  ;;  %v1066_v40 = vrot.slane %v4289_v59, 7 }
 0x6c3   :  { %3545 = vrcp.f32 %v1022_v63 }
 0x6c4   :  { %3547 = vrcp.f32 %v1023_v4 }
 0x6c5   :  { %3549 = vrcp.f32 %v1021_v31 }
 0x6c6   :  { %3551 = vrcp.f32 %v1024_v54 }
 0x6c9   :  { %v4342_v43 = vpop.eup %3537 }
 0x6ca   :  { %v3540_v11 = vpop.eup %3539  ;;  %v1076_v57 = vmul.f32 %v4342_v43, %v1060_v49 }
 0x6cb   :  { %v3542_v55 = vpop.eup %3541  ;;  %v1025_v56 = vadd.f32 1.0, %v3540_v11 }
 0x6cc   :  { %v3544_v47 = vpop.eup %3543  ;;  %v1026_v62 = vadd.f32 1.0, %v3542_v55 }
 0x6cd   :  { %3553 = vrcp.f32 %v1025_v56  ;;  %v1027_v51 = vadd.f32 1.0, %v3544_v47  ;;  %v4346_v3 = vpop.eup %3545 }
 0x6ce   :  { %3555 = vrcp.f32 %v1026_v62  ;;  %v4348_v7 = vpop.eup %3547  ;;  %v1078_v21 = vmul.f32 %v4346_v3, %v1062_v60 }
 0x6cf   :  { %3557 = vrcp.f32 %v1027_v51  ;;  %v4353_v15 = vpop.eup %3549  ;;  %v1079_v63 = vmul.f32 %v4348_v7, %v1063_v44  ;;  %v1067_v51 = vrot.slane %v4291_v2, 7 }
 0x6d0   :  { %v4356_v42 = vpop.eup %3551  ;;  %v1077_v26 = vmul.f32 %v4353_v15, %v1061_v38 }
 0x6d1   :  { %v1080_v11 = vmul.f32 %v4356_v42, %v1064_v37 }
 0x6d7   :  { %v4361_v36 = vpop.eup %3553 }
 0x6d8   :  { %v4364_v20 = vpop.eup %3555  ;;  %v1081_v56 = vmul.f32 %v4361_v36, %v1065_v24 }
 0x6d9   :  { %v4369_v28 = vpop.eup %3557  ;;  %v1082_v62 = vmul.f32 %v4364_v20, %v1066_v40 }
 0x6da   :  { %v1083_v59 = vmul.f32 %v4369_v28, %v1067_v51 }
 0x727   :  { %v1093_v6 = vpop.permute.xlu0 %1092 }
 0x728   :  { %v1116_v14 = vmul.f32 %v4342_v43, %v1093_v6  ;;  %v1097_v5 = vpop.permute.xlu1 %1096 }
 0x729   :  { %v1118_v9 = vmul.f32 %v4346_v3, %v1097_v5 }
 0x72a   :  { %1132 = vrot.lane.b32.xlu0 %v1116_v14, %s3951_s30 }
 0x72b   :  { %v1099_v10 = vpop.permute.xlu0 %1098  ;;  %1136 = vrot.lane.b32.xlu1 %v1118_v9, %s3951_s30 }
 0x72c   :  { %v1119_v13 = vmul.f32 %v4348_v7, %v1099_v10  ;;  %v1095_v17 = vpop.permute.xlu1 %1094 }
 0x72d   :  { %v1117_v18 = vmul.f32 %v4353_v15, %v1095_v17 }
 0x72e   :  { %1138 = vrot.lane.b32.xlu0 %v1119_v13, %s3951_s30 }
 0x72f   :  { %v1101_v52 = vpop.permute.xlu0 %1100  ;;  %1134 = vrot.lane.b32.xlu1 %v1117_v18, %s3951_s30 }
 0x730   :  { %v1120_v19 = vmul.f32 %v4356_v42, %v1101_v52  ;;  %v1103_v45 = vpop.permute.xlu1 %1102 }
 0x731   :  { %v1121_v25 = vmul.f32 %v4361_v36, %v1103_v45 }
 0x732   :  { %1140 = vrot.lane.b32.xlu0 %v1120_v19, %s3951_s30 }
 0x733   :  { %v1105_v53 = vpop.permute.xlu0 %1104  ;;  %1142 = vrot.lane.b32.xlu1 %v1121_v25, %s3951_s30 }
 0x734   :  { %v1122_v22 = vmul.f32 %v4364_v20, %v1105_v53  ;;  %v1107_v27 = vpop.permute.xlu1 %1106 }
 0x735   :  { %v1123_v58 = vmul.f32 %v4369_v28, %v1107_v27 }
 0x736   :  { %1144 = vrot.lane.b32.xlu0 %v1122_v22, %s3951_s30 }
 0x737   :  { %1146 = vrot.lane.b32.xlu1 %v1123_v58, %s3951_s30 }
 0x79c   :  { %v1133_v16 = vpop.permute.xlu0 %1132 }
 0x79d   :  { %v4376_v34 = vadd.f32 %v1133_v16, %v1076_v57  ;;  %v1137_v61 = vpop.permute.xlu1 %1136 }
 0x79e   :  { %v4384_v4 = vadd.f32 %v1137_v61, %v1078_v21 }
 0x79f   :  { %3559 = vtanh.f32 %v4376_v34 }
 0x7a0   :  { %v1139_v32 = vpop.permute.xlu0 %1138  ;;  %3561 = vtanh.f32 %v4384_v4 }
 0x7a1   :  { %v4387_v6 = vadd.f32 %v1139_v32, %v1079_v63  ;;  %v1135_v35 = vpop.permute.xlu1 %1134 }
 0x7a2   :  { %v4395_v14 = vadd.f32 %v1135_v35, %v1077_v26 }
 0x7a3   :  { %3563 = vtanh.f32 %v4387_v6 }
 0x7a4   :  { %v1141_v54 = vpop.permute.xlu0 %1140  ;;  %3565 = vtanh.f32 %v4395_v14 }
 0x7a5   :  { %v4398_v55 = vadd.f32 %v1141_v54, %v1080_v11  ;;  %v1143_v47 = vpop.permute.xlu1 %1142 }
 0x7a6   :  { %v4405_v5 = vadd.f32 %v1143_v47, %v1081_v56 }
 0x7a7   :  { %3567 = vtanh.f32 %v4398_v55 }
 0x7a8   :  { %v1145_v48 = vpop.permute.xlu0 %1144  ;;  %3569 = vtanh.f32 %v4405_v5 }
 0x7a9   :  { %v3560_v31 = vpop.eup %3559  ;;  %v4407_v9 = vadd.f32 %v1145_v48, %v1082_v62  ;;  %v1147_v10 = vpop.permute.xlu1 %1146 }
 0x7aa   :  { %1180 = vrot.lane.b32.xlu0 %v3560_v31, %s3950_s3  ;;  %v3562_v13 = vpop.eup %3561  ;;  %v4412_v17 = vadd.f32 %v1147_v10, %v1083_v59 }
 0x7ab   :  { %3571 = vtanh.f32 %v4407_v9  ;;  %1184 = vrot.lane.b32.xlu1 %v3562_v13, %s3950_s3 }
 0x7ac   :  { %3573 = vtanh.f32 %v4412_v17 }
 0x7ad   :  { %v3564_v18 = vpop.eup %3563 }
 0x7ae   :  { %1186 = vrot.lane.b32.xlu0 %v3564_v18, %s3950_s3  ;;  %v3566_v2 = vpop.eup %3565 }
 0x7af   :  { %1182 = vrot.lane.b32.xlu1 %v3566_v2, %s3950_s3 }
 0x7b1   :  { %v3568_v52 = vpop.eup %3567 }
 0x7b2   :  { %1188 = vrot.lane.b32.xlu0 %v3568_v52, %s3950_s3  ;;  %v3570_v19 = vpop.eup %3569 }
 0x7b3   :  { %1190 = vrot.lane.b32.xlu1 %v3570_v19, %s3950_s3 }
 0x7b5   :  { %v3572_v45 = vpop.eup %3571 }
 0x7b6   :  { %1192 = vrot.lane.b32.xlu0 %v3572_v45, %s3950_s3  ;;  %v3574_v25 = vpop.eup %3573 }
 0x7b7   :  { %1194 = vrot.lane.b32.xlu1 %v3574_v25, %s3950_s3 }
 0x81c   :  { %v1181_v53 = vpop.permute.xlu0 %1180 }
 0x81d   :  { %v1185_v22 = vpop.permute.xlu1 %1184  ;;  %v1204_v58 = vmul.f32 %v4342_v43, %v1181_v53 }
 0x81e   :  { %v1206_v38 = vmul.f32 %v4346_v3, %v1185_v22 }
 0x81f   :  { %v1220_v21 = vrot.slane %v1204_v58, 2 }
 0x820   :  { %v1187_v27 = vpop.permute.xlu0 %1186 }
 0x821   :  { %v1207_v49 = vmul.f32 %v4348_v7, %v1187_v27  ;;  %v1183_v57 = vpop.permute.xlu1 %1182 }
 0x822   :  { %v1205_v16 = vmul.f32 %v4353_v15, %v1183_v57 }
 0x823   :  { %v1224_v63 = vrot.slane %v1207_v49, 7 }
 0x824   :  { %v1189_v60 = vpop.permute.xlu0 %1188  ;;  %v1221_v61 = vrot.slane %v1205_v16, 1 }
 0x825   :  { %v1208_v44 = vmul.f32 %v4356_v42, %v1189_v60  ;;  %v1191_v32 = vpop.permute.xlu1 %1190 }
 0x826   :  { %v1222_v31 = vsel %vm542_vm3, %v1221_v61, %v1220_v21  ;;  %v1209_v26 = vmul.f32 %v4361_v36, %v1191_v32 }
 0x827   :  { %v1226_v37 = vrot.slane %v1208_v44, 6  ;;  %v1223_v7 = vsel %vm545_vm4, %v1206_v38, %v1222_v31 }
 0x828   :  { %v1193_v43 = vpop.permute.xlu0 %1192  ;;  %v1225_v15 = vsel %vm548_vm5, %v1224_v63, %v1223_v7  ;;  %v1228_v11 = vrot.slane %v1209_v26, 5 }
 0x829   :  { %v1210_v35 = vmul.f32 %v4364_v20, %v1193_v43  ;;  %v1227_v42 = vsel %vm551_vm6, %v1226_v37, %v1225_v15  ;;  %v1195_v24 = vpop.permute.xlu1 %1194 }
 0x82a   :  { %v1211_v3 = vmul.f32 %v4369_v28, %v1195_v24  ;;  %v1229_v40 = vsel %vm554_vm7, %v1228_v11, %v1227_v42 }
 0x82b   :  { %v1230_v54 = vrot.slane %v1210_v35, 4 }
 0x82c   :  { %v1232_v47 = vrot.slane %v1211_v3, 3 }
 0x82d   :  { %v1231_v56 = vsel %vm557_vm8, %v1230_v54, %v1229_v40 }
 0x82e   :  { %v1233_v36 = vsel %vm560_vm9, %v1232_v47, %v1231_v56 }
 0x82f   :  { %1234 = vrot.lane.b32.xlu0 %v1233_v36, %s3951_s30 }
 0x8a1   :  { %v1235_v62 = vpop.permute.xlu0 %1234 }
 0x8a2   :  { %3258 = vmatmul.mubr.msk.f32.vlgmr.msra.gmra.mrb[4].mxu1 %vm55_vm1, %v1235_v62 }
 0x8a3   :  { %3351 = vmatpush3.bf16.msra.mxu1 %v4025_v8  ;;  %3279 = vmatprep.mubr.msk.f32.mxu1 %vm3948_vm0, %v3949_v1 }
 0x8a4   :  { %3352 = vmatprep.subr.bf16.mxu1 %v3947_v0 }
 0x8a7   :  { %3354 = vmatpush3.bf16.msra.mxu1 %v4035_v12 }
 0x8a8   :  { %3361 = vmatprep.subr.bf16.mxu1 %v3947_v0 }
 0x975   :  { %v1304_v20 = vpop.f32.mrb[4].mxu1 }
 0x976   :  { %v3259_v28 = vpop.f32.mrb[5].mxu1  ;;  %v1310_v51 = vrot.slane %v1304_v20, 6  ;;  %v1312_v48 = vrot.slane %v1304_v20, 1  ;;  %v1309_v10 = vrot.slane %v1304_v20, 5  ;;  %v1327_v13 = vadd.f32 %v1304_v20, %v4066_v29 }
 0x977   :  { %v1313_v18 = vrot.slane %v1304_v20, 2  ;;  %v1311_v52 = vrot.slane %v1304_v20, 7  ;;  %v1315_v45 = vrot.slane %v1304_v20, 4  ;;  %v1314_v53 = vrot.slane %v1304_v20, 3 }
 0x978   :  { %v1325_v59 = vadd.f32 %v1310_v51, %v4068_v30  ;;  %v1328_v2 = vadd.f32 %v1312_v48, %v4083_v41  ;;  %v1324_v19 = vadd.f32 %v1309_v10, %v4064_v23  ;;  %v3102_v32 = vmul.f32 -1.442695, %v1327_v13 }
 0x979   :  { %v1329_v25 = vadd.f32 %v1313_v18, %v4080_v39  ;;  %v1326_v22 = vadd.f32 %v1311_v52, %v4073_v33  ;;  %v1331_v27 = vadd.f32 %v1315_v45, %v4086_v46  ;;  %v1330_v49 = vadd.f32 %v1314_v53, %v4090_v50 }
 0x97a   :  { %3575 = vtanh.f32 %v1325_v59  ;;  %v3100_v38 = vmul.f32 -1.442695, %v1325_v59  ;;  %v3103_v37 = vmul.f32 -1.442695, %v1328_v2  ;;  %v3099_v31 = vmul.f32 -1.442695, %v1324_v19 }
 0x97b   :  { %3577 = vtanh.f32 %v1327_v13  ;;  %v3104_v26 = vmul.f32 -1.442695, %v1329_v25  ;;  %v3101_v43 = vmul.f32 -1.442695, %v1326_v22  ;;  %v3106_v7 = vmul.f32 -1.442695, %v1331_v27 }
 0x97c   :  { %3579 = vtanh.f32 %v1328_v2  ;;  %v3105_v15 = vmul.f32 -1.442695, %v1330_v49 }
 0x97d   :  { %3581 = vtanh.f32 %v1324_v19 }
 0x97e   :  { %3583 = vtanh.f32 %v1329_v25 }
 0x97f   :  { %3585 = vtanh.f32 %v1326_v22 }
 0x980   :  { %3587 = vtanh.f32 %v1331_v27 }
 0x981   :  { %3589 = vtanh.f32 %v1330_v49 }
 0x982   :  { %3591 = vpow2.f32 %v3100_v38 }
 0x983   :  { %3593 = vpow2.f32 %v3102_v32 }
 0x984   :  { %v3576_v58 = vpop.eup %3575  ;;  %3595 = vpow2.f32 %v3103_v37 }
 0x985   :  { %1430 = vrot.lane.b32.xlu0 %v3576_v58, %s3950_s3  ;;  %v3578_v57 = vpop.eup %3577  ;;  %3597 = vpow2.f32 %v3099_v31 }
 0x986   :  { %1434 = vrot.lane.b32.xlu1 %v3578_v57, %s3950_s3  ;;  %v3580_v16 = vpop.eup %3579  ;;  %3599 = vpow2.f32 %v3104_v26  ;;  %v1397_v26 = vrot.slane %v4395_v14, 7 }
 0x987   :  { %v3582_v60 = vpop.eup %3581  ;;  %3601 = vpow2.f32 %v3101_v43  ;;  %v1399_v43 = vrot.slane %v4387_v6, 7  ;;  %v1401_v6 = vrot.slane %v4405_v5, 7 }
 0x988   :  { %v3584_v44 = vpop.eup %3583  ;;  %3603 = vpow2.f32 %v3106_v7 }
 0x989   :  { %1436 = vrot.lane.b32.xlu0 %v3580_v16, %s3950_s3  ;;  %v3586_v21 = vpop.eup %3585  ;;  %3605 = vpow2.f32 %v3105_v15  ;;  %v1400_v15 = vrot.slane %v4398_v55, 7 }
 0x98a   :  { %1428 = vrot.lane.b32.xlu1 %v3582_v60, %s3950_s3  ;;  %v3588_v61 = vpop.eup %3587 }
 0x98b   :  { %v3590_v63 = vpop.eup %3589 }
 0x98c   :  { %v3592_v35 = vpop.eup %3591 }
 0x98d   :  { %1438 = vrot.lane.b32.xlu0 %v3584_v44, %s3950_s3  ;;  %v3594_v11 = vpop.eup %3593  ;;  %v1357_v42 = vadd.f32 1.0, %v3592_v35 }
 0x98e   :  { %1432 = vrot.lane.b32.xlu1 %v3586_v21, %s3950_s3  ;;  %v3596_v24 = vpop.eup %3595  ;;  %v1359_v54 = vadd.f32 1.0, %v3594_v11 }
 0x98f   :  { %v3598_v3 = vpop.eup %3597  ;;  %3607 = vrcp.f32 %v1357_v42  ;;  %v1360_v40 = vadd.f32 1.0, %v3596_v24 }
 0x990   :  { %v3600_v56 = vpop.eup %3599  ;;  %3609 = vrcp.f32 %v1359_v54  ;;  %v1356_v47 = vadd.f32 1.0, %v3598_v3  ;;  %v1396_v54 = vrot.slane %v4376_v34, 7 }
 0x991   :  { %1442 = vrot.lane.b32.xlu0 %v3588_v61, %s3950_s3  ;;  %v3602_v36 = vpop.eup %3601  ;;  %3611 = vrcp.f32 %v1360_v40  ;;  %v1361_v62 = vadd.f32 1.0, %v3600_v56 }
 0x992   :  { %1440 = vrot.lane.b32.xlu1 %v3590_v63, %s3950_s3  ;;  %v3604_v20 = vpop.eup %3603  ;;  %3613 = vrcp.f32 %v1356_v47  ;;  %v1358_v28 = vadd.f32 1.0, %v3602_v36  ;;  %v1398_v36 = vrot.slane %v4384_v4, 7 }
 0x993   :  { %v3606_v51 = vpop.eup %3605  ;;  %3615 = vrcp.f32 %v1361_v62  ;;  %v1363_v48 = vadd.f32 1.0, %v3604_v20 }
 0x994   :  { %3617 = vrcp.f32 %v1358_v28  ;;  %v1362_v13 = vadd.f32 1.0, %v3606_v51  ;;  %v1403_v28 = vrot.slane %v4412_v17, 7 }
 0x995   :  { %3619 = vrcp.f32 %v1363_v48 }
 0x996   :  { %3621 = vrcp.f32 %v1362_v13 }
 0x999   :  { %v4461_v59 = vpop.eup %3607 }
 0x99a   :  { %v4464_v2 = vpop.eup %3609  ;;  %v1413_v7 = vmul.f32 %v4461_v59, %v1397_v26 }
 0x99b   :  { %v4468_v45 = vpop.eup %3611  ;;  %v1415_v11 = vmul.f32 %v4464_v2, %v1399_v43 }
 0x99c   :  { %v4472_v22 = vpop.eup %3613  ;;  %v1416_v14 = vmul.f32 %v4468_v45, %v1400_v15 }
 0x99d   :  { %v4476_v49 = vpop.eup %3615  ;;  %v1412_v55 = vmul.f32 %v4472_v22, %v1396_v54 }
 0x99e   :  { %v4480_v60 = vpop.eup %3617  ;;  %v1417_v34 = vmul.f32 %v4476_v49, %v1401_v6 }
 0x99f   :  { %v4484_v61 = vpop.eup %3619  ;;  %v1414_v5 = vmul.f32 %v4480_v60, %v1398_v36 }
 0x9a0   :  { %v4488_v32 = vpop.eup %3621  ;;  %v1419_v4 = vmul.f32 %v4484_v61, %v1403_v28 }
 0x9f7   :  { %v1431_v10 = vpop.permute.xlu0 %1430 }
 0x9f8   :  { %v1453_v18 = vmul.f32 %v4461_v59, %v1431_v10  ;;  %v1435_v52 = vpop.permute.xlu1 %1434  ;;  %v1402_v10 = vrot.slane %v4407_v9, 7 }
 0x9f9   :  { %v1455_v19 = vmul.f32 %v4464_v2, %v1435_v52 }
 0x9fa   :  { %1470 = vrot.lane.b32.xlu0 %v1453_v18, %s3951_s30  ;;  %v1418_v17 = vmul.f32 %v4488_v32, %v1402_v10 }
 0x9fb   :  { %v1437_v25 = vpop.permute.xlu0 %1436  ;;  %1474 = vrot.lane.b32.xlu1 %v1455_v19, %s3951_s30 }
 0x9fc   :  { %v1456_v53 = vmul.f32 %v4468_v45, %v1437_v25  ;;  %v1429_v27 = vpop.permute.xlu1 %1428 }
 0x9fd   :  { %v1452_v58 = vmul.f32 %v4472_v22, %v1429_v27 }
 0x9fe   :  { %1476 = vrot.lane.b32.xlu0 %v1456_v53, %s3951_s30 }
 0x9ff   :  { %v1439_v57 = vpop.permute.xlu0 %1438  ;;  %1468 = vrot.lane.b32.xlu1 %v1452_v58, %s3951_s30 }
 0xa00   :  { %v1457_v16 = vmul.f32 %v4476_v49, %v1439_v57  ;;  %v1433_v44 = vpop.permute.xlu1 %1432 }
 0xa01   :  { %v1454_v21 = vmul.f32 %v4480_v60, %v1433_v44 }
 0xa02   :  { %1478 = vrot.lane.b32.xlu0 %v1457_v16, %s3951_s30 }
 0xa03   :  { %v1443_v63 = vpop.permute.xlu0 %1442  ;;  %1472 = vrot.lane.b32.xlu1 %v1454_v21, %s3951_s30 }
 0xa04   :  { %v1459_v38 = vmul.f32 %v4484_v61, %v1443_v63  ;;  %v1441_v37 = vpop.permute.xlu1 %1440 }
 0xa05   :  { %v1458_v31 = vmul.f32 %v4488_v32, %v1441_v37 }
 0xa06   :  { %1482 = vrot.lane.b32.xlu0 %v1459_v38, %s3951_s30 }
 0xa07   :  { %1480 = vrot.lane.b32.xlu1 %v1458_v31, %s3951_s30 }
 0xa6c   :  { %v1471_v35 = vpop.permute.xlu0 %1470 }
 0xa6d   :  { %v4498_v42 = vadd.f32 %v1471_v35, %v1413_v7  ;;  %v1475_v24 = vpop.permute.xlu1 %1474 }
 0xa6e   :  { %v4501_v3 = vadd.f32 %v1475_v24, %v1415_v11 }
 0xa6f   :  { %3623 = vtanh.f32 %v4498_v42 }
 0xa70   :  { %v1477_v40 = vpop.permute.xlu0 %1476  ;;  %3625 = vtanh.f32 %v4501_v3 }
 0xa71   :  { %v4508_v56 = vadd.f32 %v1477_v40, %v1416_v14  ;;  %v1469_v47 = vpop.permute.xlu1 %1468 }
 0xa72   :  { %v4511_v62 = vadd.f32 %v1469_v47, %v1412_v55 }
 0xa73   :  { %3627 = vtanh.f32 %v4508_v56 }
 0xa74   :  { %v1479_v20 = vpop.permute.xlu0 %1478  ;;  %3629 = vtanh.f32 %v4511_v62 }
 0xa75   :  { %v4518_v51 = vadd.f32 %v1479_v20, %v1417_v34  ;;  %v1473_v48 = vpop.permute.xlu1 %1472 }
 0xa76   :  { %v4521_v13 = vadd.f32 %v1473_v48, %v1414_v5 }
 0xa77   :  { %3631 = vtanh.f32 %v4518_v51 }
 0xa78   :  { %v1483_v18 = vpop.permute.xlu0 %1482  ;;  %3633 = vtanh.f32 %v4521_v13 }
 0xa79   :  { %v3624_v52 = vpop.eup %3623  ;;  %v4527_v19 = vadd.f32 %v1483_v18, %v1419_v4  ;;  %v1481_v25 = vpop.permute.xlu1 %1480 }
 0xa7a   :  { %1518 = vrot.lane.b32.xlu0 %v3624_v52, %s3950_s3  ;;  %v3626_v53 = vpop.eup %3625  ;;  %v4530_v27 = vadd.f32 %v1481_v25, %v1418_v17 }
 0xa7b   :  { %3635 = vtanh.f32 %v4527_v19  ;;  %1522 = vrot.lane.b32.xlu1 %v3626_v53, %s3950_s3 }
 0xa7c   :  { %3637 = vtanh.f32 %v4530_v27 }
 0xa7d   :  { %v3628_v9 = vpop.eup %3627 }
 0xa7e   :  { %1524 = vrot.lane.b32.xlu0 %v3628_v9, %s3950_s3  ;;  %v3630_v58 = vpop.eup %3629 }
 0xa7f   :  { %1516 = vrot.lane.b32.xlu1 %v3630_v58, %s3950_s3 }
 0xa81   :  { %v3632_v57 = vpop.eup %3631 }
 0xa82   :  { %1526 = vrot.lane.b32.xlu0 %v3632_v57, %s3950_s3  ;;  %v3634_v16 = vpop.eup %3633 }
 0xa83   :  { %1520 = vrot.lane.b32.xlu1 %v3634_v16, %s3950_s3 }
 0xa85   :  { %v3636_v44 = vpop.eup %3635 }
 0xa86   :  { %1530 = vrot.lane.b32.xlu0 %v3636_v44, %s3950_s3  ;;  %v3638_v21 = vpop.eup %3637 }
 0xa87   :  { %1528 = vrot.lane.b32.xlu1 %v3638_v21, %s3950_s3 }
 0xaec   :  { %v1519_v63 = vpop.permute.xlu0 %1518 }
 0xaed   :  { %v1523_v38 = vpop.permute.xlu1 %1522  ;;  %v1541_v43 = vmul.f32 %v4461_v59, %v1519_v63 }
 0xaee   :  { %v1543_v47 = vmul.f32 %v4464_v2, %v1523_v38 }
 0xaef   :  { %v1557_v14 = vrot.slane %v1541_v43, 2 }
 0xaf0   :  { %v1525_v37 = vpop.permute.xlu0 %1524 }
 0xaf1   :  { %v1517_v31 = vpop.permute.xlu1 %1516  ;;  %v1544_v24 = vmul.f32 %v4468_v45, %v1525_v37 }
 0xaf2   :  { %v1540_v26 = vmul.f32 %v4472_v22, %v1517_v31 }
 0xaf3   :  { %v1562_v34 = vrot.slane %v1544_v24, 7 }
 0xaf4   :  { %v1527_v7 = vpop.permute.xlu0 %1526  ;;  %v1556_v35 = vrot.slane %v1540_v26, 3 }
 0xaf5   :  { %v1521_v15 = vpop.permute.xlu1 %1520  ;;  %v1545_v11 = vmul.f32 %v4476_v49, %v1527_v7 }
 0xaf6   :  { %v1542_v54 = vmul.f32 %v4480_v60, %v1521_v15  ;;  %v1558_v22 = vsel %vm542_vm3, %v1557_v14, %v1556_v35 }
 0xaf7   :  { %v1564_v36 = vrot.slane %v1545_v11, 6 }
 0xaf8   :  { %v1531_v40 = vpop.permute.xlu0 %1530  ;;  %v1559_v6 = vrot.slane %v1542_v54, 1 }
 0xaf9   :  { %v1547_v55 = vmul.f32 %v4484_v61, %v1531_v40  ;;  %v1529_v59 = vpop.permute.xlu1 %1528 }
 0xafa   :  { %v1560_v20 = vsel %vm545_vm4, %v1559_v6, %v1558_v22  ;;  %v1546_v49 = vmul.f32 %v4488_v32, %v1529_v59 }
 0xafb   :  { %v1561_v45 = vsel %vm548_vm5, %v1543_v47, %v1560_v20  ;;  %v1568_v28 = vrot.slane %v1547_v55, 4 }
 0xafc   :  { %v1563_v60 = vsel %vm551_vm6, %v1562_v34, %v1561_v45  ;;  %v1566_v5 = vrot.slane %v1546_v49, 5 }
 0xafd   :  { %v1565_v48 = vsel %vm554_vm7, %v1564_v36, %v1563_v60 }
 0xafe   :  { %v1567_v61 = vsel %vm557_vm8, %v1566_v5, %v1565_v48 }
 0xaff   :  { %v1569_v2 = vsel %vm560_vm9, %v1568_v28, %v1567_v61 }
 0xb00   :  { %1570 = vrot.lane.b32.xlu1 %v1569_v2, %s3951_s30 }
 0xb72   :  { %v1571_v10 = vpop.permute.xlu1 %1570 }
 0xb73   :  { %3269 = vmatmul.mubr.msk.f32.vlgmr.msra.gmra.mrb[10].mxu0 %vm55_vm1, %v1571_v10 }
 0xb74   :  { %3357 = vmatpush3.bf16.msra.mxu0 %v4025_v8  ;;  %3290 = vmatprep.mubr.msk.f32.mxu0 %vm3948_vm0, %v3949_v1 }
 0xb75   :  { %3358 = vmatprep.subr.bf16.mxu0 %v3947_v0 }
 0xb78   :  { %3360 = vmatpush3.bf16.msra.mxu0 %v4035_v12 }
 0xb79   :  { %3367 = vmatprep.subr.bf16.mxu0 %v3947_v0 }
 0xc46   :  { %v1640_v32 = vpop.f32.mrb[10].mxu0 }
 0xc47   :  { %v1645_v4 = vrot.slane %v1640_v32, 4  ;;  %v3270_v18 = vpop.f32.mrb[11].mxu0  ;;  %v1647_v17 = vrot.slane %v1640_v32, 6  ;;  %v1649_v25 = vrot.slane %v1640_v32, 1  ;;  %v1646_v9 = vrot.slane %v1640_v32, 5 }
 0xc48   :  { %v1664_v58 = vadd.f32 %v1640_v32, %v4083_v41  ;;  %v1650_v16 = vrot.slane %v1640_v32, 2  ;;  %v1648_v21 = vrot.slane %v1640_v32, 7  ;;  %v1651_v37 = vrot.slane %v1640_v32, 3 }
 0xc49   :  { %v1660_v52 = vadd.f32 %v1645_v4, %v4064_v23  ;;  %v1662_v53 = vadd.f32 %v1647_v17, %v4073_v33  ;;  %v1665_v44 = vadd.f32 %v1649_v25, %v4080_v39  ;;  %v1661_v63 = vadd.f32 %v1646_v9, %v4068_v30 }
 0xc4a   :  { %v1666_v38 = vadd.f32 %v1650_v16, %v4090_v50  ;;  %v1663_v31 = vadd.f32 %v1648_v21, %v4066_v29  ;;  %v1667_v43 = vadd.f32 %v1651_v37, %v4086_v46  ;;  %v3112_v6 = vmul.f32 -1.442695, %v1664_v58 }
 0xc4b   :  { %3639 = vtanh.f32 %v1660_v52  ;;  %v3108_v14 = vmul.f32 -1.442695, %v1660_v52  ;;  %v3110_v40 = vmul.f32 -1.442695, %v1662_v53  ;;  %v3113_v47 = vmul.f32 -1.442695, %v1665_v44 }
 0xc4c   :  { %3641 = vtanh.f32 %v1662_v53  ;;  %v3109_v22 = vmul.f32 -1.442695, %v1661_v63  ;;  %v3114_v59 = vmul.f32 -1.442695, %v1666_v38  ;;  %v3111_v34 = vmul.f32 -1.442695, %v1663_v31 }
 0xc4d   :  { %3643 = vtanh.f32 %v1664_v58  ;;  %v3115_v49 = vmul.f32 -1.442695, %v1667_v43 }
 0xc4e   :  { %3645 = vtanh.f32 %v1665_v44 }
 0xc4f   :  { %3647 = vtanh.f32 %v1661_v63 }
 0xc50   :  { %3649 = vtanh.f32 %v1666_v38 }
 0xc51   :  { %3651 = vtanh.f32 %v1663_v31 }
 0xc52   :  { %3653 = vtanh.f32 %v1667_v43 }
 0xc53   :  { %3655 = vpow2.f32 %v3108_v14 }
 0xc54   :  { %3657 = vpow2.f32 %v3110_v40 }
 0xc55   :  { %v3640_v57 = vpop.eup %3639  ;;  %3659 = vpow2.f32 %v3112_v6 }
 0xc56   :  { %1764 = vrot.lane.b32.xlu0 %v3640_v57, %s3950_s3  ;;  %v3642_v26 = vpop.eup %3641  ;;  %3661 = vpow2.f32 %v3113_v47  ;;  %v1732_v47 = vrot.slane %v4511_v62, 7 }
 0xc57   :  { %v3644_v7 = vpop.eup %3643  ;;  %3663 = vpow2.f32 %v3109_v22 }
 0xc58   :  { %1772 = vrot.lane.b32.xlu1 %v3644_v7, %s3950_s3  ;;  %v3646_v35 = vpop.eup %3645 }
 0xc59   :  { %v3648_v15 = vpop.eup %3647 }
 0xc5a   :  { %1768 = vrot.lane.b32.xlu0 %v3642_v26, %s3950_s3  ;;  %v3650_v11 = vpop.eup %3649 }
 0xc5b   :  { %v3652_v24 = vpop.eup %3651 }
 0xc5c   :  { %1766 = vrot.lane.b32.xlu1 %v3648_v15, %s3950_s3  ;;  %v3654_v54 = vpop.eup %3653 }
 0xc5d   :  { %v3656_v55 = vpop.eup %3655 }
 0xc5e   :  { %1774 = vrot.lane.b32.xlu0 %v3646_v35, %s3950_s3  ;;  %v1692_v36 = vadd.f32 1.0, %v3656_v55  ;;  %v3658_v20 = vpop.eup %3657 }
 0xc5f   :  { %v3660_v45 = vpop.eup %3659  ;;  %v1694_v28 = vadd.f32 1.0, %v3658_v20  ;;  %v1736_v20 = vrot.slane %v4508_v56, 7 }
 0xc60   :  { %1770 = vrot.lane.b32.xlu1 %v3652_v24, %s3950_s3  ;;  %3665 = vrcp.f32 %v1692_v36  ;;  %v3662_v60 = vpop.eup %3661  ;;  %v1696_v5 = vadd.f32 1.0, %v3660_v45 }
 0xc61   :  { %3667 = vpow2.f32 %v3114_v59  ;;  %v3664_v48 = vpop.eup %3663  ;;  %v1697_v10 = vadd.f32 1.0, %v3662_v60 }
 0xc62   :  { %1776 = vrot.lane.b32.xlu0 %v3650_v11, %s3950_s3  ;;  %3669 = vpow2.f32 %v3111_v34  ;;  %v1693_v18 = vadd.f32 1.0, %v3664_v48  ;;  %v1734_v34 = vrot.slane %v4521_v13, 7 }
 0xc63   :  { %3671 = vpow2.f32 %v3115_v49 }
 0xc64   :  { %1778 = vrot.lane.b32.xlu1 %v3654_v54, %s3950_s3  ;;  %3673 = vrcp.f32 %v1694_v28  ;;  %v1737_v28 = vrot.slane %v4518_v51, 7 }
 0xc65   :  { %3675 = vrcp.f32 %v1696_v5 }
 0xc66   :  { %3677 = vrcp.f32 %v1697_v10 }
 0xc67   :  { %3679 = vrcp.f32 %v1693_v18 }
 0xc6a   :  { %v4580_v61 = vpop.eup %3665 }
 0xc6b   :  { %v3668_v32 = vpop.eup %3667  ;;  %v1748_v22 = vmul.f32 %v4580_v61, %v1732_v47 }
 0xc6c   :  { %v3670_v52 = vpop.eup %3669  ;;  %v1698_v17 = vadd.f32 1.0, %v3668_v32  ;;  %v1738_v32 = vrot.slane %v4530_v27, 7 }
 0xc6d   :  { %v1695_v25 = vadd.f32 1.0, %v3670_v52  ;;  %v3672_v53 = vpop.eup %3671 }
 0xc6e   :  { %3681 = vrcp.f32 %v1698_v17  ;;  %v4584_v9 = vpop.eup %3673  ;;  %v1699_v57 = vadd.f32 1.0, %v3672_v53 }
 0xc6f   :  { %3683 = vrcp.f32 %v1695_v25  ;;  %v4587_v44 = vpop.eup %3675  ;;  %v1750_v49 = vmul.f32 %v4584_v9, %v1734_v34 }
 0xc70   :  { %v4591_v38 = vpop.eup %3677  ;;  %3685 = vrcp.f32 %v1699_v57  ;;  %v1752_v60 = vmul.f32 %v4587_v44, %v1736_v20  ;;  %v1739_v57 = vrot.slane %v4527_v19, 7 }
 0xc71   :  { %v4595_v26 = vpop.eup %3679  ;;  %v1753_v13 = vmul.f32 %v4591_v38, %v1737_v28 }
 0xc78   :  { %v4599_v35 = vpop.eup %3681 }
 0xc79   :  { %v4603_v24 = vpop.eup %3683  ;;  %v1754_v17 = vmul.f32 %v4599_v35, %v1738_v32 }
 0xc7a   :  { %v4608_v40 = vpop.eup %3685 }
 0xcc8   :  { %v1765_v2 = vpop.permute.xlu0 %1764 }
 0xcc9   :  { %v1788_v4 = vmul.f32 %v4580_v61, %v1765_v2  ;;  %v1733_v2 = vrot.slane %v4498_v42, 7  ;;  %v1735_v42 = vrot.slane %v4501_v3, 7 }
 0xcca   :  { %v1773_v21 = vpop.permute.xlu1 %1772 }
 0xccb   :  { %1804 = vrot.lane.b32.xlu0 %v1788_v4, %s3951_s30  ;;  %v1792_v63 = vmul.f32 %v4587_v44, %v1773_v21  ;;  %v1749_v51 = vmul.f32 %v4595_v26, %v1733_v2  ;;  %v1751_v27 = vmul.f32 %v4603_v24, %v1735_v42  ;;  %v1755_v21 = vmul.f32 %v4608_v40, %v1739_v57 }
 0xccc   :  { %v1769_v58 = vpop.permute.xlu0 %1768 }
 0xccd   :  { %v1790_v16 = vmul.f32 %v4584_v9, %v1769_v58  ;;  %1812 = vrot.lane.b32.xlu1 %v1792_v63, %s3951_s30 }
 0xcce   :  { %v1767_v43 = vpop.permute.xlu1 %1766 }
 0xccf   :  { %1808 = vrot.lane.b32.xlu0 %v1790_v16, %s3951_s30  ;;  %v1789_v7 = vmul.f32 %v4595_v26, %v1767_v43 }
 0xcd0   :  { %v1775_v37 = vpop.permute.xlu0 %1774 }
 0xcd1   :  { %v1793_v31 = vmul.f32 %v4591_v38, %v1775_v37  ;;  %1806 = vrot.lane.b32.xlu1 %v1789_v7, %s3951_s30 }
 0xcd2   :  { %v1771_v54 = vpop.permute.xlu1 %1770 }
 0xcd3   :  { %1814 = vrot.lane.b32.xlu0 %v1793_v31, %s3951_s30  ;;  %v1791_v14 = vmul.f32 %v4603_v24, %v1771_v54 }
 0xcd4   :  { %v1777_v15 = vpop.permute.xlu0 %1776 }
 0xcd5   :  { %v1794_v11 = vmul.f32 %v4599_v35, %v1777_v15  ;;  %1810 = vrot.lane.b32.xlu1 %v1791_v14, %s3951_s30 }
 0xcd6   :  { %v1779_v6 = vpop.permute.xlu1 %1778 }
 0xcd7   :  { %1816 = vrot.lane.b32.xlu0 %v1794_v11, %s3951_s30  ;;  %v1795_v55 = vmul.f32 %v4608_v40, %v1779_v6 }
 0xcd9   :  { %1818 = vrot.lane.b32.xlu1 %v1795_v55, %s3951_s30 }
 0xd3d   :  { %v1805_v36 = vpop.permute.xlu0 %1804 }
 0xd3e   :  { %v4614_v59 = vadd.f32 %v1805_v36, %v1748_v22 }
 0xd3f   :  { %v1813_v62 = vpop.permute.xlu1 %1812 }
 0xd40   :  { %3687 = vtanh.f32 %v4614_v59  ;;  %v4625_v10 = vadd.f32 %v1813_v62, %v1752_v60 }
 0xd41   :  { %v1809_v45 = vpop.permute.xlu0 %1808 }
 0xd42   :  { %v4622_v5 = vadd.f32 %v1809_v45, %v1750_v49 }
 0xd43   :  { %v1807_v18 = vpop.permute.xlu1 %1806 }
 0xd44   :  { %3689 = vtanh.f32 %v4622_v5  ;;  %v4636_v52 = vadd.f32 %v1807_v18, %v1749_v51 }
 0xd45   :  { %v1815_v56 = vpop.permute.xlu0 %1814  ;;  %3691 = vtanh.f32 %v4625_v10 }
 0xd46   :  { %v4633_v4 = vadd.f32 %v1815_v56, %v1753_v13 }
 0xd47   :  { %v1811_v58 = vpop.permute.xlu1 %1810 }
 0xd48   :  { %3693 = vtanh.f32 %v4633_v4  ;;  %v4645_v16 = vadd.f32 %v1811_v58, %v1751_v27 }
 0xd49   :  { %v1817_v25 = vpop.permute.xlu0 %1816  ;;  %3695 = vtanh.f32 %v4636_v52 }
 0xd4a   :  { %v3688_v48 = vpop.eup %3687  ;;  %v4642_v53 = vadd.f32 %v1817_v25, %v1754_v17 }
 0xd4b   :  { %1852 = vrot.lane.b32.xlu0 %v3688_v48, %s3950_s3  ;;  %v1819_v63 = vpop.permute.xlu1 %1818 }
 0xd4c   :  { %3697 = vtanh.f32 %v4642_v53  ;;  %v4651_v31 = vadd.f32 %v1819_v63, %v1755_v21 }
 0xd4d   :  { %3699 = vtanh.f32 %v4645_v16 }
 0xd4e   :  { %v3690_v3 = vpop.eup %3689  ;;  %3701 = vtanh.f32 %v4651_v31 }
 0xd4f   :  { %1856 = vrot.lane.b32.xlu0 %v3690_v3, %s3950_s3  ;;  %v3692_v37 = vpop.eup %3691 }
 0xd50   :  { %1860 = vrot.lane.b32.xlu1 %v3692_v37, %s3950_s3 }
 0xd52   :  { %v3694_v43 = vpop.eup %3693 }
 0xd53   :  { %1862 = vrot.lane.b32.xlu0 %v3694_v43, %s3950_s3  ;;  %v3696_v19 = vpop.eup %3695 }
 0xd54   :  { %1854 = vrot.lane.b32.xlu1 %v3696_v19, %s3950_s3 }
 0xd56   :  { %v3698_v7 = vpop.eup %3697 }
 0xd57   :  { %1864 = vrot.lane.b32.xlu0 %v3698_v7, %s3950_s3  ;;  %v3700_v15 = vpop.eup %3699 }
 0xd58   :  { %1858 = vrot.lane.b32.xlu1 %v3700_v15, %s3950_s3  ;;  %v3702_v11 = vpop.eup %3701 }
 0xd5c   :  { %1866 = vrot.lane.b32.xlu1 %v3702_v11, %s3950_s3 }
 0xdbd   :  { %v1853_v54 = vpop.permute.xlu0 %1852 }
 0xdbe   :  { %v1876_v22 = vmul.f32 %v4580_v61, %v1853_v54 }
 0xdc0   :  { %v1892_v45 = vrot.slane %v1876_v22, 4 }
 0xdc1   :  { %v1857_v14 = vpop.permute.xlu0 %1856 }
 0xdc2   :  { %v1861_v6 = vpop.permute.xlu1 %1860  ;;  %v1878_v55 = vmul.f32 %v4584_v9, %v1857_v14 }
 0xdc3   :  { %v1880_v32 = vmul.f32 %v4587_v44, %v1861_v6 }
 0xdc4   :  { %v1895_v20 = vrot.slane %v1878_v55, 2 }
 0xdc5   :  { %v1863_v47 = vpop.permute.xlu0 %1862 }
 0xdc6   :  { %v1855_v36 = vpop.permute.xlu1 %1854  ;;  %v1881_v60 = vmul.f32 %v4591_v38, %v1863_v47 }
 0xdc7   :  { %v1877_v34 = vmul.f32 %v4595_v26, %v1855_v36 }
 0xdc8   :  { %v1900_v61 = vrot.slane %v1881_v60, 7 }
 0xdc9   :  { %v1865_v49 = vpop.permute.xlu0 %1864  ;;  %v1893_v28 = vrot.slane %v1877_v34, 3 }
 0xdca   :  { %v1859_v62 = vpop.permute.xlu1 %1858  ;;  %v1882_v48 = vmul.f32 %v4599_v35, %v1865_v49 }
 0xdcb   :  { %v1894_v2 = vsel %vm542_vm3, %v1893_v28, %v1892_v45  ;;  %v1879_v13 = vmul.f32 %v4603_v24, %v1859_v62 }
 0xdcc   :  { %v1896_v9 = vsel %vm545_vm4, %v1895_v20, %v1894_v2  ;;  %v1902_v51 = vrot.slane %v1882_v48, 6 }
 0xdcd   :  { %v1897_v56 = vrot.slane %v1879_v13, 1 }
 0xdce   :  { %v1867_v26 = vpop.permute.xlu1 %1866 }
 0xdcf   :  { %v1898_v18 = vsel %vm548_vm5, %v1897_v56, %v1896_v9  ;;  %v1883_v42 = vmul.f32 %v4608_v40, %v1867_v26 }
 0xdd0   :  { %v1899_v38 = vsel %vm551_vm6, %v1880_v32, %v1898_v18 }
 0xdd1   :  { %v1901_v35 = vsel %vm554_vm7, %v1900_v61, %v1899_v38  ;;  %v1904_v17 = vrot.slane %v1883_v42, 5 }
 0xdd2   :  { %v1903_v25 = vsel %vm557_vm8, %v1902_v51, %v1901_v35 }
 0xdd3   :  { %v1905_v24 = vsel %vm560_vm9, %v1904_v17, %v1903_v25 }
 0xdd4   :  { %1906 = vrot.lane.b32.xlu0 %v1905_v24, %s3951_s30 }
 0xe46   :  { %v1907_v27 = vpop.permute.xlu0 %1906 }
 0xe47   :  { %3280 = vmatmul.mubr.msk.f32.vlgmr.msra.gmra.mrb[6].mxu1 %vm55_vm1, %v1907_v27 }
 0xe48   :  { %3363 = vmatpush3.bf16.msra.mxu1 %v4025_v8  ;;  %3301 = vmatprep.mubr.msk.f32.mxu1 %vm3948_vm0, %v3949_v1 }
 0xe49   :  { %3364 = vmatprep.subr.bf16.mxu1 %v3947_v0 }
 0xe4c   :  { %3366 = vmatpush3.bf16.msra.mxu1 %v4035_v12 }
 0xf1a   :  { %v1976_v44 = vpop.f32.mrb[6].mxu1 }
 0xf1b   :  { %v1981_v40 = vrot.slane %v1976_v44, 3  ;;  %v3281_v58 = vpop.f32.mrb[7].mxu1  ;;  %v1982_v3 = vrot.slane %v1976_v44, 4  ;;  %v1983_v21 = vrot.slane %v1976_v44, 5  ;;  %v1984_v63 = vrot.slane %v1976_v44, 6 }
 0xf1c   :  { %v1985_v43 = vrot.slane %v1976_v44, 7  ;;  %v1986_v19 = vrot.slane %v1976_v44, 1  ;;  %v1987_v11 = vrot.slane %v1976_v44, 2  ;;  %v2001_v14 = vadd.f32 %v1976_v44, %v4080_v39 }
 0xf1d   :  { %v1996_v57 = vadd.f32 %v1981_v40, %v4064_v23  ;;  %v1997_v37 = vadd.f32 %v1982_v3, %v4068_v30  ;;  %v1998_v8 = vadd.f32 %v1983_v21, %v4073_v33  ;;  %v1999_v7 = vadd.f32 %v1984_v63, %v4066_v29 }
 0xf1e   :  { %v2000_v12 = vadd.f32 %v1985_v43, %v4083_v41  ;;  %v2002_v54 = vadd.f32 %v1986_v19, %v4090_v50  ;;  %v2003_v6 = vadd.f32 %v1987_v11, %v4086_v46  ;;  %v3122_v56 = vmul.f32 -1.442695, %v2001_v14 }
 0xf1f   :  { %3703 = vtanh.f32 %v1996_v57  ;;  %v3117_v45 = vmul.f32 -1.442695, %v1996_v57  ;;  %v3118_v28 = vmul.f32 -1.442695, %v1997_v37  ;;  %v3119_v60 = vmul.f32 -1.442695, %v1998_v8 }
 0xf20   :  { %3705 = vtanh.f32 %v1997_v37  ;;  %v3120_v62 = vmul.f32 -1.442695, %v1999_v7  ;;  %v3121_v2 = vmul.f32 -1.442695, %v2000_v12  ;;  %v3123_v13 = vmul.f32 -1.442695, %v2002_v54 }
 0xf21   :  { %3707 = vtanh.f32 %v1998_v8  ;;  %v3124_v61 = vmul.f32 -1.442695, %v2003_v6 }
 0xf22   :  { %3709 = vtanh.f32 %v1999_v7 }
 0xf23   :  { %3711 = vtanh.f32 %v2000_v12 }
 0xf24   :  { %3713 = vtanh.f32 %v2002_v54 }
 0xf25   :  { %3715 = vtanh.f32 %v2001_v14 }
 0xf26   :  { %3717 = vtanh.f32 %v2003_v6 }
 0xf27   :  { %3719 = vpow2.f32 %v3117_v45 }
 0xf28   :  { %3721 = vpow2.f32 %v3118_v28 }
 0xf29   :  { %v3704_v15 = vpop.eup %3703  ;;  %3723 = vpow2.f32 %v3119_v60  ;;  %v2068_v60 = vrot.slane %v4614_v59, 7 }
 0xf2a   :  { %2100 = vrot.lane.b32.xlu1 %v3704_v15, %s3950_s3  ;;  %v3706_v55 = vpop.eup %3705  ;;  %3725 = vpow2.f32 %v3120_v62 }
 0xf2b   :  { %v3708_v47 = vpop.eup %3707  ;;  %2102 = vrot.lane.b32.xlu0 %v3706_v55, %s3950_s3  ;;  %3727 = vpow2.f32 %v3121_v2 }
 0xf2c   :  { %v3710_v22 = vpop.eup %3709  ;;  %3729 = vpow2.f32 %v3123_v13  ;;  %v2069_v13 = vrot.slane %v4636_v52, 7 }
 0xf2d   :  { %v3712_v36 = vpop.eup %3711 }
 0xf2e   :  { %2104 = vrot.lane.b32.xlu1 %v3708_v47, %s3950_s3  ;;  %v3714_v34 = vpop.eup %3713 }
 0xf2f   :  { %2106 = vrot.lane.b32.xlu0 %v3710_v22, %s3950_s3  ;;  %v3716_v20 = vpop.eup %3715 }
 0xf30   :  { %v3718_v49 = vpop.eup %3717 }
 0xf31   :  { %v3720_v48 = vpop.eup %3719 }
 0xf32   :  { %2108 = vrot.lane.b32.xlu1 %v3712_v36, %s3950_s3  ;;  %v2028_v9 = vadd.f32 1.0, %v3720_v48  ;;  %v3722_v32 = vpop.eup %3721 }
 0xf33   :  { %2112 = vrot.lane.b32.xlu0 %v3714_v34, %s3950_s3  ;;  %v3724_v26 = vpop.eup %3723  ;;  %v2029_v51 = vadd.f32 1.0, %v3722_v32 }
 0xf34   :  { %3731 = vrcp.f32 %v2028_v9  ;;  %v3726_v18 = vpop.eup %3725  ;;  %v2030_v42 = vadd.f32 1.0, %v3724_v26  ;;  %v2070_v9 = vrot.slane %v4622_v5, 7  ;;  %v2071_v26 = vrot.slane %v4645_v16, 7 }
 0xf35   :  { %3733 = vpow2.f32 %v3122_v56  ;;  %v3728_v38 = vpop.eup %3727  ;;  %v2031_v17 = vadd.f32 1.0, %v3726_v18  ;;  %v2072_v18 = vrot.slane %v4625_v10, 7  ;;  %v2073_v10 = vrot.slane %v4633_v4, 7 }
 0xf36   :  { %2110 = vrot.lane.b32.xlu1 %v3716_v20, %s3950_s3  ;;  %3735 = vpow2.f32 %v3124_v61  ;;  %v3730_v35 = vpop.eup %3729  ;;  %v2032_v27 = vadd.f32 1.0, %v3728_v38 }
 0xf37   :  { %2114 = vrot.lane.b32.xlu0 %v3718_v49, %s3950_s3  ;;  %3737 = vrcp.f32 %v2029_v51  ;;  %v2034_v58 = vadd.f32 1.0, %v3730_v35 }
 0xf38   :  { %3739 = vrcp.f32 %v2030_v42 }
 0xf39   :  { %3741 = vrcp.f32 %v2031_v17  ;;  %v2074_v17 = vrot.slane %v4642_v53, 7  ;;  %v2075_v53 = vrot.slane %v4651_v31, 7 }
 0xf3a   :  { %3743 = vrcp.f32 %v2032_v27 }
 0xf3b   :  { %3745 = vrcp.f32 %v2034_v58 }
 0xf3e   :  { %v4698_v25 = vpop.eup %3731 }
 0xf3f   :  { %v3734_v44 = vpop.eup %3733  ;;  %v2084_v62 = vmul.f32 %v4698_v25, %v2068_v60 }
 0xf40   :  { %v3736_v57 = vpop.eup %3735  ;;  %v2033_v3 = vadd.f32 1.0, %v3734_v44 }
 0xf41   :  { %v2035_v21 = vadd.f32 1.0, %v3736_v57  ;;  %v4702_v63 = vpop.eup %3737 }
 0xf42   :  { %3747 = vrcp.f32 %v2033_v3  ;;  %v4704_v43 = vpop.eup %3739  ;;  %v2085_v56 = vmul.f32 %v4702_v63, %v2069_v13 }
 0xf43   :  { %3749 = vrcp.f32 %v2035_v21  ;;  %v4709_v15 = vpop.eup %3741  ;;  %v2086_v32 = vmul.f32 %v4704_v43, %v2070_v9 }
 0xf44   :  { %v4712_v11 = vpop.eup %3743  ;;  %v2087_v52 = vmul.f32 %v4709_v15, %v2071_v26 }
 0xf45   :  { %v4717_v55 = vpop.eup %3745  ;;  %v2088_v35 = vmul.f32 %v4712_v11, %v2072_v18 }
 0xf46   :  { %v2090_v44 = vmul.f32 %v4717_v55, %v2074_v17 }
 0xf4c   :  { %v4720_v22 = vpop.eup %3747 }
 0xf4d   :  { %v4725_v49 = vpop.eup %3749  ;;  %v2089_v58 = vmul.f32 %v4720_v22, %v2073_v10 }
 0xf4e   :  { %v2091_v4 = vmul.f32 %v4725_v49, %v2075_v53 }
 0xf9c   :  { %v2101_v24 = vpop.permute.xlu1 %2100 }
 0xf9d   :  { %v2124_v40 = vmul.f32 %v4698_v25, %v2101_v24  ;;  %v2103_v37 = vpop.permute.xlu0 %2102 }
 0xf9e   :  { %v2125_v8 = vmul.f32 %v4702_v63, %v2103_v37 }
 0xf9f   :  { %2140 = vrot.lane.b32.xlu1 %v2124_v40, %s3951_s30 }
 0xfa0   :  { %v2105_v19 = vpop.permute.xlu1 %2104  ;;  %2142 = vrot.lane.b32.xlu0 %v2125_v8, %s3951_s30 }
 0xfa1   :  { %v2126_v7 = vmul.f32 %v4704_v43, %v2105_v19  ;;  %v2107_v12 = vpop.permute.xlu0 %2106 }
 0xfa2   :  { %v2127_v54 = vmul.f32 %v4709_v15, %v2107_v12 }
 0xfa3   :  { %2144 = vrot.lane.b32.xlu1 %v2126_v7, %s3951_s30 }
 0xfa4   :  { %v2109_v14 = vpop.permute.xlu1 %2108  ;;  %2146 = vrot.lane.b32.xlu0 %v2127_v54, %s3951_s30 }
 0xfa5   :  { %v2128_v6 = vmul.f32 %v4712_v11, %v2109_v14  ;;  %v2113_v47 = vpop.permute.xlu0 %2112 }
 0xfa6   :  { %v2130_v36 = vmul.f32 %v4717_v55, %v2113_v47 }
 0xfa7   :  { %2148 = vrot.lane.b32.xlu1 %v2128_v6, %s3951_s30 }
 0xfa8   :  { %v2111_v34 = vpop.permute.xlu1 %2110  ;;  %2152 = vrot.lane.b32.xlu0 %v2130_v36, %s3951_s30 }
 0xfa9   :  { %v2129_v20 = vmul.f32 %v4720_v22, %v2111_v34  ;;  %v2115_v45 = vpop.permute.xlu0 %2114 }
 0xfaa   :  { %v2131_v28 = vmul.f32 %v4725_v49, %v2115_v45 }
 0xfab   :  { %2150 = vrot.lane.b32.xlu1 %v2129_v20, %s3951_s30 }
 0xfac   :  { %2154 = vrot.lane.b32.xlu0 %v2131_v28, %s3951_s30 }
0x1011   :  { %v2141_v48 = vpop.permute.xlu1 %2140 }
0x1012   :  { %v4732_v2 = vadd.f32 %v2141_v48, %v2084_v62  ;;  %v2143_v61 = vpop.permute.xlu0 %2142 }
0x1013   :  { %v4740_v51 = vadd.f32 %v2143_v61, %v2085_v56 }
0x1014   :  { %3751 = vtanh.f32 %v4732_v2 }
0x1015   :  { %v2145_v59 = vpop.permute.xlu1 %2144  ;;  %3753 = vtanh.f32 %v4740_v51 }
0x1016   :  { %v4743_v42 = vadd.f32 %v2145_v59, %v2086_v32  ;;  %v2147_v5 = vpop.permute.xlu0 %2146 }
0x1017   :  { %v4750_v16 = vadd.f32 %v2147_v5, %v2087_v52 }
0x1018   :  { %3755 = vtanh.f32 %v4743_v42 }
0x1019   :  { %v2149_v24 = vpop.permute.xlu1 %2148  ;;  %3757 = vtanh.f32 %v4750_v16 }
0x101a   :  { %v4754_v27 = vadd.f32 %v2149_v24, %v2088_v35  ;;  %v2153_v40 = vpop.permute.xlu0 %2152 }
0x101b   :  { %v4761_v57 = vadd.f32 %v2153_v40, %v2090_v44 }
0x101c   :  { %3759 = vtanh.f32 %v4754_v27 }
0x101d   :  { %v2151_v3 = vpop.permute.xlu1 %2150  ;;  %3761 = vtanh.f32 %v4761_v57 }
0x101e   :  { %v3752_v38 = vpop.eup %3751  ;;  %v4763_v21 = vadd.f32 %v2151_v3, %v2089_v58  ;;  %v2155_v37 = vpop.permute.xlu0 %2154 }
0x101f   :  { %2188 = vrot.lane.b32.xlu1 %v3752_v38, %s3950_s3  ;;  %v3754_v8 = vpop.eup %3753  ;;  %v4768_v19 = vadd.f32 %v2155_v37, %v2091_v4 }
0x1020   :  { %3763 = vtanh.f32 %v4763_v21  ;;  %2190 = vrot.lane.b32.xlu0 %v3754_v8, %s3950_s3 }
0x1021   :  { %3765 = vtanh.f32 %v4768_v19 }
0x1022   :  { %v3756_v7 = vpop.eup %3755 }
0x1023   :  { %2192 = vrot.lane.b32.xlu1 %v3756_v7, %s3950_s3  ;;  %v3758_v31 = vpop.eup %3757 }
0x1024   :  { %2194 = vrot.lane.b32.xlu0 %v3758_v31, %s3950_s3 }
0x1026   :  { %v3760_v12 = vpop.eup %3759 }
0x1027   :  { %2196 = vrot.lane.b32.xlu1 %v3760_v12, %s3950_s3  ;;  %v3762_v54 = vpop.eup %3761 }
0x1028   :  { %2200 = vrot.lane.b32.xlu0 %v3762_v54, %s3950_s3 }
0x102a   :  { %v3764_v14 = vpop.eup %3763 }
0x102b   :  { %2198 = vrot.lane.b32.xlu1 %v3764_v14, %s3950_s3  ;;  %v3766_v6 = vpop.eup %3765 }
0x102c   :  { %2202 = vrot.lane.b32.xlu0 %v3766_v6, %s3950_s3 }
0x1091   :  { %v2189_v47 = vpop.permute.xlu1 %2188 }
0x1092   :  { %v2212_v36 = vmul.f32 %v4698_v25, %v2189_v47  ;;  %v2191_v34 = vpop.permute.xlu0 %2190 }
0x1093   :  { %v2213_v20 = vmul.f32 %v4702_v63, %v2191_v34 }
0x1094   :  { %v2228_v45 = vrot.slane %v2212_v36, 5 }
0x1095   :  { %v2193_v28 = vpop.permute.xlu1 %2192  ;;  %v2229_v62 = vrot.slane %v2213_v20, 4 }
0x1096   :  { %v2214_v60 = vmul.f32 %v4704_v43, %v2193_v28  ;;  %v2195_v48 = vpop.permute.xlu0 %2194 }
0x1097   :  { %v2230_v9 = vsel %vm542_vm3, %v2229_v62, %v2228_v45  ;;  %v2215_v56 = vmul.f32 %v4709_v15, %v2195_v48 }
0x1098   :  { %v2231_v13 = vrot.slane %v2214_v60, 3 }
0x1099   :  { %v2197_v61 = vpop.permute.xlu1 %2196  ;;  %v2233_v25 = vrot.slane %v2215_v56, 2 }
0x109a   :  { %v2232_v32 = vsel %vm545_vm4, %v2231_v13, %v2230_v9  ;;  %v2216_v26 = vmul.f32 %v4712_v11, %v2197_v61  ;;  %v2201_v59 = vpop.permute.xlu0 %2200 }
0x109b   :  { %v2218_v63 = vmul.f32 %v4717_v55, %v2201_v59  ;;  %v2234_v52 = vsel %vm548_vm5, %v2233_v25, %v2232_v32 }
0x109c   :  { %v2235_v18 = vrot.slane %v2216_v26, 1 }
0x109d   :  { %v2199_v43 = vpop.permute.xlu1 %2198  ;;  %v2238_v35 = vrot.slane %v2218_v63, 7 }
0x109e   :  { %v2236_v38 = vsel %vm551_vm6, %v2235_v18, %v2234_v52  ;;  %v2217_v5 = vmul.f32 %v4720_v22, %v2199_v43  ;;  %v2203_v17 = vpop.permute.xlu0 %2202 }
0x109f   :  { %v2219_v24 = vmul.f32 %v4725_v49, %v2203_v17 }
0x10a0   :  { %v2237_v15 = vsel %vm554_vm7, %v2217_v5, %v2236_v38 }
0x10a1   :  { %v2239_v11 = vsel %vm557_vm8, %v2238_v35, %v2237_v15  ;;  %v2240_v10 = vrot.slane %v2219_v24, 6 }
0x10a3   :  { %v2241_v44 = vsel %vm560_vm9, %v2240_v10, %v2239_v11 }
0x10a4   :  { %2242 = vrot.lane.b32.xlu1 %v2241_v44, %s3951_s30 }
0x1116   :  { %v2243_v55 = vpop.permute.xlu1 %2242 }
0x1117   :  { %3291 = vmatmul.mubr.msk.f32.vlgmr.msra.gmra.mrb[12].mxu0 %vm55_vm1, %v2243_v55 }
0x1118   :  { %3312 = vmatprep.mubr.msk.f32.mxu0 %vm3948_vm0, %v3949_v1 }
0x11ea   :  { %v2312_v22 = vpop.f32.mrb[12].mxu0 }
0x11eb   :  { %v2317_v40 = vrot.slane %v2312_v22, 2  ;;  %v3292_v58 = vpop.f32.mrb[13].mxu0  ;;  %v2318_v49 = vrot.slane %v2312_v22, 3  ;;  %v2319_v3 = vrot.slane %v2312_v22, 4  ;;  %v2320_v4 = vrot.slane %v2312_v22, 5 }
0x11ec   :  { %v2321_v8 = vrot.slane %v2312_v22, 6  ;;  %v2322_v31 = vrot.slane %v2312_v22, 7  ;;  %v2323_v1 = vrot.slane %v2312_v22, 1  ;;  %v2338_v36 = vadd.f32 %v2312_v22, %v4090_v50 }
0x11ed   :  { %v2332_v53 = vadd.f32 %v2317_v40, %v4064_v23  ;;  %v2333_v37 = vadd.f32 %v2318_v49, %v4068_v30  ;;  %v2334_v7 = vadd.f32 %v2319_v3, %v4073_v33  ;;  %v2335_v12 = vadd.f32 %v2320_v4, %v4066_v29 }
0x11ee   :  { %v2336_v14 = vadd.f32 %v2321_v8, %v4083_v41  ;;  %v2337_v6 = vadd.f32 %v2322_v31, %v4080_v39  ;;  %v2339_v47 = vadd.f32 %v2323_v1, %v4086_v46  ;;  %v3132_v63 = vmul.f32 -1.442695, %v2338_v36 }
0x11ef   :  { %3767 = vtanh.f32 %v2332_v53  ;;  %v3126_v13 = vmul.f32 -1.442695, %v2332_v53  ;;  %v3127_v9 = vmul.f32 -1.442695, %v2333_v37  ;;  %v3128_v56 = vmul.f32 -1.442695, %v2334_v7 }
0x11f0   :  { %3769 = vtanh.f32 %v2333_v37  ;;  %v3129_v61 = vmul.f32 -1.442695, %v2335_v12  ;;  %v3130_v26 = vmul.f32 -1.442695, %v2336_v14  ;;  %v3131_v25 = vmul.f32 -1.442695, %v2337_v6 }
0x11f1   :  { %3771 = vtanh.f32 %v2334_v7  ;;  %v3133_v18 = vmul.f32 -1.442695, %v2339_v47 }
0x11f2   :  { %3773 = vtanh.f32 %v2335_v12 }
0x11f3   :  { %3775 = vtanh.f32 %v2336_v14 }
0x11f4   :  { %3777 = vtanh.f32 %v2337_v6 }
0x11f5   :  { %3779 = vtanh.f32 %v2339_v47 }
0x11f6   :  { %3781 = vtanh.f32 %v2338_v36 }
0x11f7   :  { %3783 = vpow2.f32 %v3126_v13 }
0x11f8   :  { %3785 = vpow2.f32 %v3127_v9  ;;  %v2404_v9 = vrot.slane %v4732_v2, 7 }
0x11f9   :  { %v3768_v54 = vpop.eup %3767  ;;  %3787 = vpow2.f32 %v3128_v56 }
0x11fa   :  { %2436 = vrot.lane.b32.xlu0 %v3768_v54, %s3950_s3  ;;  %v3770_v34 = vpop.eup %3769  ;;  %3789 = vpow2.f32 %v3129_v61 }
0x11fb   :  { %v3772_v20 = vpop.eup %3771  ;;  %2438 = vrot.lane.b32.xlu1 %v3770_v34, %s3950_s3  ;;  %3791 = vpow2.f32 %v3130_v26  ;;  %v2405_v26 = vrot.slane %v4740_v51, 7 }
0x11fc   :  { %v3774_v45 = vpop.eup %3773  ;;  %3793 = vpow2.f32 %v3131_v25  ;;  %v2406_v25 = vrot.slane %v4743_v42, 7 }
0x11fd   :  { %v3776_v28 = vpop.eup %3775 }
0x11fe   :  { %2440 = vrot.lane.b32.xlu0 %v3772_v20, %s3950_s3  ;;  %v3778_v60 = vpop.eup %3777 }
0x11ff   :  { %2442 = vrot.lane.b32.xlu1 %v3774_v45, %s3950_s3  ;;  %v3780_v62 = vpop.eup %3779 }
0x1200   :  { %v3782_v48 = vpop.eup %3781 }
0x1201   :  { %v3784_v32 = vpop.eup %3783 }
0x1202   :  { %2444 = vrot.lane.b32.xlu0 %v3776_v28, %s3950_s3  ;;  %v2364_v59 = vadd.f32 1.0, %v3784_v32  ;;  %v3786_v52 = vpop.eup %3785 }
0x1203   :  { %2446 = vrot.lane.b32.xlu1 %v3778_v60, %s3950_s3  ;;  %v3788_v43 = vpop.eup %3787  ;;  %v2365_v38 = vadd.f32 1.0, %v3786_v52  ;;  %v2407_v52 = vrot.slane %v4750_v16, 7 }
0x1204   :  { %3795 = vrcp.f32 %v2364_v59  ;;  %v3790_v5 = vpop.eup %3789  ;;  %v2366_v35 = vadd.f32 1.0, %v3788_v43 }
0x1205   :  { %3797 = vpow2.f32 %v3133_v18  ;;  %v3792_v17 = vpop.eup %3791  ;;  %v2367_v24 = vadd.f32 1.0, %v3790_v5 }
0x1206   :  { %2450 = vrot.lane.b32.xlu0 %v3780_v62, %s3950_s3  ;;  %3799 = vpow2.f32 %v3132_v63  ;;  %v3794_v15 = vpop.eup %3793  ;;  %v2368_v44 = vadd.f32 1.0, %v3792_v17 }
0x1207   :  { %2448 = vrot.lane.b32.xlu1 %v3782_v48, %s3950_s3  ;;  %3801 = vrcp.f32 %v2365_v38  ;;  %v2369_v40 = vadd.f32 1.0, %v3794_v15  ;;  %v2408_v38 = vrot.slane %v4754_v27, 7  ;;  %v2409_v15 = vrot.slane %v4763_v21, 7 }
0x1208   :  { %3803 = vrcp.f32 %v2366_v35  ;;  %v2411_v27 = vrot.slane %v4768_v19, 7  ;;  %v2410_v21 = vrot.slane %v4761_v57, 7 }
0x1209   :  { %3805 = vrcp.f32 %v2367_v24 }
0x120a   :  { %3807 = vrcp.f32 %v2368_v44 }
0x120b   :  { %3809 = vrcp.f32 %v2369_v40 }
0x120e   :  { %v4813_v11 = vpop.eup %3795 }
0x120f   :  { %v3798_v55 = vpop.eup %3797  ;;  %v2420_v56 = vmul.f32 %v4813_v11, %v2404_v9 }
0x1210   :  { %v3800_v58 = vpop.eup %3799  ;;  %v2371_v53 = vadd.f32 1.0, %v3798_v55 }
0x1211   :  { %v2370_v49 = vadd.f32 1.0, %v3800_v58  ;;  %v4817_v3 = vpop.eup %3801 }
0x1212   :  { %3811 = vrcp.f32 %v2371_v53  ;;  %v4819_v37 = vpop.eup %3803  ;;  %v2421_v59 = vmul.f32 %v4817_v3, %v2405_v26 }
0x1213   :  { %3813 = vrcp.f32 %v2370_v49  ;;  %v4824_v12 = vpop.eup %3805  ;;  %v2422_v63 = vmul.f32 %v4819_v37, %v2406_v25 }
0x1214   :  { %v4827_v1 = vpop.eup %3807  ;;  %v2423_v51 = vmul.f32 %v4824_v12, %v2407_v52 }
0x1215   :  { %v4832_v36 = vpop.eup %3809  ;;  %v2424_v17 = vmul.f32 %v4827_v1, %v2408_v38 }
0x1216   :  { %v2425_v44 = vmul.f32 %v4832_v36, %v2409_v15 }
0x121c   :  { %v4835_v20 = vpop.eup %3811 }
0x121d   :  { %v4840_v62 = vpop.eup %3813 }
0x121e   :  { %v2426_v19 = vmul.f32 %v4840_v62, %v2410_v21 }
0x126c   :  { %v2437_v10 = vpop.permute.xlu0 %2436 }
0x126d   :  { %v2460_v22 = vmul.f32 %v4813_v11, %v2437_v10  ;;  %v2439_v4 = vpop.permute.xlu1 %2438 }
0x126e   :  { %v2461_v8 = vmul.f32 %v4817_v3, %v2439_v4 }
0x126f   :  { %2476 = vrot.lane.b32.xlu0 %v2460_v22, %s3951_s30  ;;  %v2427_v22 = vmul.f32 %v4835_v20, %v2411_v27 }
0x1270   :  { %v2441_v7 = vpop.permute.xlu0 %2440  ;;  %2478 = vrot.lane.b32.xlu1 %v2461_v8, %s3951_s30 }
0x1271   :  { %v2462_v31 = vmul.f32 %v4819_v37, %v2441_v7  ;;  %v2443_v54 = vpop.permute.xlu1 %2442 }
0x1272   :  { %v2463_v14 = vmul.f32 %v4824_v12, %v2443_v54 }
0x1273   :  { %2480 = vrot.lane.b32.xlu0 %v2462_v31, %s3951_s30 }
0x1274   :  { %v2445_v6 = vpop.permute.xlu0 %2444  ;;  %2482 = vrot.lane.b32.xlu1 %v2463_v14, %s3951_s30 }
0x1275   :  { %v2464_v47 = vmul.f32 %v4827_v1, %v2445_v6  ;;  %v2447_v34 = vpop.permute.xlu1 %2446 }
0x1276   :  { %v2465_v45 = vmul.f32 %v4832_v36, %v2447_v34 }
0x1277   :  { %2484 = vrot.lane.b32.xlu0 %v2464_v47, %s3951_s30 }
0x1278   :  { %v2451_v28 = vpop.permute.xlu0 %2450  ;;  %2486 = vrot.lane.b32.xlu1 %v2465_v45, %s3951_s30 }
0x1279   :  { %v2467_v60 = vmul.f32 %v4835_v20, %v2451_v28  ;;  %v2449_v48 = vpop.permute.xlu1 %2448 }
0x127a   :  { %v2466_v13 = vmul.f32 %v4840_v62, %v2449_v48 }
0x127b   :  { %2490 = vrot.lane.b32.xlu0 %v2467_v60, %s3951_s30 }
0x127c   :  { %2488 = vrot.lane.b32.xlu1 %v2466_v13, %s3951_s30 }
0x12e1   :  { %v2477_v61 = vpop.permute.xlu0 %2476 }
0x12e2   :  { %v4847_v32 = vadd.f32 %v2477_v61, %v2420_v56  ;;  %v2479_v18 = vpop.permute.xlu1 %2478 }
0x12e3   :  { %v4855_v43 = vadd.f32 %v2479_v18, %v2421_v59 }
0x12e4   :  { %3815 = vtanh.f32 %v4847_v32 }
0x12e5   :  { %v2481_v2 = vpop.permute.xlu0 %2480  ;;  %3817 = vtanh.f32 %v4855_v43 }
0x12e6   :  { %v4858_v5 = vadd.f32 %v2481_v2, %v2422_v63  ;;  %v2483_v42 = vpop.permute.xlu1 %2482 }
0x12e7   :  { %v4865_v16 = vadd.f32 %v2483_v42, %v2423_v51 }
0x12e8   :  { %3819 = vtanh.f32 %v4858_v5 }
0x12e9   :  { %v2485_v24 = vpop.permute.xlu0 %2484  ;;  %3821 = vtanh.f32 %v4865_v16 }
0x12ea   :  { %v4869_v10 = vadd.f32 %v2485_v24, %v2424_v17  ;;  %v2487_v55 = vpop.permute.xlu1 %2486 }
0x12eb   :  { %v4876_v40 = vadd.f32 %v2487_v55, %v2425_v44 }
0x12ec   :  { %3823 = vtanh.f32 %v4869_v10 }
0x12ed   :  { %v2491_v58 = vpop.permute.xlu0 %2490  ;;  %3825 = vtanh.f32 %v4876_v40 }
0x12ee   :  { %v3816_v35 = vpop.eup %3815  ;;  %v4878_v53 = vadd.f32 %v2491_v58, %v2427_v22  ;;  %v2489_v49 = vpop.permute.xlu1 %2488 }
0x12ef   :  { %2524 = vrot.lane.b32.xlu0 %v3816_v35, %s3950_s3  ;;  %v3818_v4 = vpop.eup %3817  ;;  %v4883_v8 = vadd.f32 %v2489_v49, %v2426_v19 }
0x12f0   :  { %3827 = vtanh.f32 %v4878_v53  ;;  %2526 = vrot.lane.b32.xlu1 %v3818_v4, %s3950_s3 }
0x12f1   :  { %3829 = vtanh.f32 %v4883_v8 }
0x12f2   :  { %v3820_v7 = vpop.eup %3819 }
0x12f3   :  { %2528 = vrot.lane.b32.xlu0 %v3820_v7, %s3950_s3  ;;  %v3822_v57 = vpop.eup %3821 }
0x12f4   :  { %2530 = vrot.lane.b32.xlu1 %v3822_v57, %s3950_s3 }
0x12f6   :  { %v3824_v31 = vpop.eup %3823 }
0x12f7   :  { %2532 = vrot.lane.b32.xlu0 %v3824_v31, %s3950_s3  ;;  %v3826_v54 = vpop.eup %3825 }
0x12f8   :  { %2534 = vrot.lane.b32.xlu1 %v3826_v54, %s3950_s3 }
0x12fa   :  { %v3828_v14 = vpop.eup %3827 }
0x12fb   :  { %2538 = vrot.lane.b32.xlu0 %v3828_v14, %s3950_s3  ;;  %v3830_v6 = vpop.eup %3829 }
0x12fc   :  { %2536 = vrot.lane.b32.xlu1 %v3830_v6, %s3950_s3 }
0x1361   :  { %v2525_v47 = vpop.permute.xlu0 %2524 }
0x1362   :  { %v2548_v34 = vmul.f32 %v4813_v11, %v2525_v47  ;;  %v2527_v45 = vpop.permute.xlu1 %2526 }
0x1363   :  { %v2549_v28 = vmul.f32 %v4817_v3, %v2527_v45 }
0x1364   :  { %v2564_v60 = vrot.slane %v2548_v34, 6 }
0x1365   :  { %v2529_v48 = vpop.permute.xlu0 %2528  ;;  %v2565_v9 = vrot.slane %v2549_v28, 5 }
0x1366   :  { %v2550_v13 = vmul.f32 %v4819_v37, %v2529_v48  ;;  %v2531_v56 = vpop.permute.xlu1 %2530 }
0x1367   :  { %v2566_v26 = vsel %vm542_vm3, %v2565_v9, %v2564_v60  ;;  %v2551_v25 = vmul.f32 %v4824_v12, %v2531_v56 }
0x1368   :  { %v2567_v61 = vrot.slane %v2550_v13, 4 }
0x1369   :  { %v2533_v59 = vpop.permute.xlu0 %2532  ;;  %v2569_v11 = vrot.slane %v2551_v25, 3 }
0x136a   :  { %v2568_v18 = vsel %vm545_vm4, %v2567_v61, %v2566_v26  ;;  %v2552_v63 = vmul.f32 %v4827_v1, %v2533_v59  ;;  %v2535_v52 = vpop.permute.xlu1 %2534 }
0x136b   :  { %v2553_v3 = vmul.f32 %v4832_v36, %v2535_v52  ;;  %v2570_v38 = vsel %vm548_vm5, %v2569_v11, %v2568_v18 }
0x136c   :  { %v2571_v2 = vrot.slane %v2552_v63, 2 }
0x136d   :  { %v2539_v37 = vpop.permute.xlu0 %2538  ;;  %v2573_v42 = vrot.slane %v2553_v3, 1 }
0x136e   :  { %v2572_v51 = vsel %vm551_vm6, %v2571_v2, %v2570_v38  ;;  %v2555_v35 = vmul.f32 %v4835_v20, %v2539_v37  ;;  %v2537_v17 = vpop.permute.xlu1 %2536 }
0x136f   :  { %v2554_v15 = vmul.f32 %v4840_v62, %v2537_v17  ;;  %v2574_v24 = vsel %vm554_vm7, %v2573_v42, %v2572_v51 }
0x1370   :  { %v2576_v12 = vrot.slane %v2555_v35, 7 }
0x1371   :  { %v2575_v1 = vsel %vm557_vm8, %v2554_v15, %v2574_v24 }
0x1372   :  { %v2577_v27 = vsel %vm560_vm9, %v2576_v12, %v2575_v1 }
0x1373   :  { %2578 = vrot.lane.b32.xlu0 %v2577_v27, %s3951_s30 }
0x13e5   :  { %v2579_v36 = vpop.permute.xlu0 %2578 }
0x13e6   :  { %3302 = vmatmul.mubr.msk.f32.vlgmr.msra.gmra.mrb[8].mxu1 %vm55_vm1, %v2579_v36 }
0x14b9   :  { %v2648_v44 = vpop.f32.mrb[8].mxu1 }
0x14ba   :  { %v2653_v55 = vrot.slane %v2648_v44, 1  ;;  %v3303_v22 = vpop.f32.mrb[9].mxu1  ;;  %v2654_v21 = vrot.slane %v2648_v44, 2  ;;  %v2655_v58 = vrot.slane %v2648_v44, 3  ;;  %v2656_v62 = vrot.slane %v2648_v44, 4 }
0x14bb   :  { %v2657_v49 = vrot.slane %v2648_v44, 5  ;;  %v2658_v7 = vrot.slane %v2648_v44, 6  ;;  %v2659_v54 = vrot.slane %v2648_v44, 7 }
0x14bc   :  { %v2668_v20 = vadd.f32 %v2653_v55, %v4064_v23  ;;  %v2669_v19 = vadd.f32 %v2654_v21, %v4068_v30  ;;  %v2670_v4 = vadd.f32 %v2655_v58, %v4073_v33  ;;  %v2671_v57 = vadd.f32 %v2656_v62, %v4066_v29 }
0x14bd   :  { %v2672_v14 = vadd.f32 %v2657_v49, %v4083_v41  ;;  %v2673_v23 = vadd.f32 %v2658_v7, %v4080_v39  ;;  %v2674_v6 = vadd.f32 %v2659_v54, %v4090_v50  ;;  %v2675_v30 = vadd.f32 %v2648_v44, %v4086_v46 }
0x14be   :  { %3831 = vtanh.f32 %v2668_v20  ;;  %v3135_v34 = vmul.f32 -1.442695, %v2668_v20  ;;  %v3136_v45 = vmul.f32 -1.442695, %v2669_v19  ;;  %v3137_v28 = vmul.f32 -1.442695, %v2670_v4 }
0x14bf   :  { %3833 = vtanh.f32 %v2669_v19  ;;  %v3138_v60 = vmul.f32 -1.442695, %v2671_v57  ;;  %v3139_v13 = vmul.f32 -1.442695, %v2672_v14  ;;  %v3140_v9 = vmul.f32 -1.442695, %v2673_v23 }
0x14c0   :  { %3835 = vtanh.f32 %v2670_v4  ;;  %v3141_v61 = vmul.f32 -1.442695, %v2674_v6  ;;  %v3142_v26 = vmul.f32 -1.442695, %v2675_v30 }
0x14c1   :  { %3837 = vtanh.f32 %v2671_v57 }
0x14c2   :  { %3839 = vtanh.f32 %v2672_v14 }
0x14c3   :  { %3841 = vtanh.f32 %v2673_v23 }
0x14c4   :  { %3843 = vtanh.f32 %v2674_v6 }
0x14c5   :  { %3845 = vtanh.f32 %v2675_v30 }
0x14c6   :  { %3847 = vpow2.f32 %v3135_v34 }
0x14c7   :  { %3849 = vpow2.f32 %v3136_v45 }
0x14c8   :  { %v3832_v31 = vpop.eup %3831  ;;  %3851 = vpow2.f32 %v3137_v28  ;;  %v2743_v28 = vrot.slane %v4865_v16, 7  ;;  %v2746_v16 = vrot.slane %v4883_v8, 7 }
0x14c9   :  { %2772 = vrot.lane.b32.xlu1 %v3832_v31, %s3950_s3  ;;  %v3834_v33 = vpop.eup %3833  ;;  %3853 = vpow2.f32 %v3138_v60 }
0x14ca   :  { %v3836_v29 = vpop.eup %3835  ;;  %2774 = vrot.lane.b32.xlu0 %v3834_v33, %s3950_s3  ;;  %3855 = vpow2.f32 %v3139_v13  ;;  %v2740_v33 = vrot.slane %v4847_v32, 7 }
0x14cb   :  { %v3838_v41 = vpop.eup %3837  ;;  %3857 = vpow2.f32 %v3140_v9 }
0x14cc   :  { %v3840_v47 = vpop.eup %3839 }
0x14cd   :  { %2776 = vrot.lane.b32.xlu1 %v3836_v29, %s3950_s3  ;;  %v3842_v39 = vpop.eup %3841 }
0x14ce   :  { %2778 = vrot.lane.b32.xlu0 %v3838_v41, %s3950_s3  ;;  %v3844_v50 = vpop.eup %3843 }
0x14cf   :  { %v3846_v46 = vpop.eup %3845 }
0x14d0   :  { %v3848_v48 = vpop.eup %3847 }
0x14d1   :  { %2780 = vrot.lane.b32.xlu1 %v3840_v47, %s3950_s3  ;;  %v2700_v56 = vadd.f32 1.0, %v3848_v48  ;;  %v3850_v25 = vpop.eup %3849  ;;  %v2744_v48 = vrot.slane %v4869_v10, 7 }
0x14d2   :  { %2782 = vrot.lane.b32.xlu0 %v3842_v39, %s3950_s3  ;;  %v3852_v59 = vpop.eup %3851  ;;  %v2701_v18 = vadd.f32 1.0, %v3850_v25  ;;  %v2741_v39 = vrot.slane %v4855_v43, 7  ;;  %v2745_v25 = vrot.slane %v4876_v40, 7  ;;  %v2747_v40 = vrot.slane %v4878_v53, 7 }
0x14d3   :  { %3859 = vrcp.f32 %v2700_v56  ;;  %v3854_v63 = vpop.eup %3853  ;;  %v2702_v11 = vadd.f32 1.0, %v3852_v59 }
0x14d4   :  { %3861 = vpow2.f32 %v3141_v61  ;;  %v3856_v52 = vpop.eup %3855  ;;  %v2703_v3 = vadd.f32 1.0, %v3854_v63 }
0x14d5   :  { %2784 = vrot.lane.b32.xlu1 %v3844_v50, %s3950_s3  ;;  %3863 = vpow2.f32 %v3142_v26  ;;  %v3858_v2 = vpop.eup %3857  ;;  %v2704_v51 = vadd.f32 1.0, %v3856_v52  ;;  %v2742_v50 = vrot.slane %v4858_v5, 7 }
0x14d6   :  { %2786 = vrot.lane.b32.xlu0 %v3846_v46, %s3950_s3  ;;  %3865 = vrcp.f32 %v2701_v18  ;;  %v2705_v17 = vadd.f32 1.0, %v3858_v2 }
0x14d7   :  { %3867 = vrcp.f32 %v2702_v11 }
0x14d8   :  { %3869 = vrcp.f32 %v2703_v3 }
0x14d9   :  { %3871 = vrcp.f32 %v2704_v51 }
0x14da   :  { %3873 = vrcp.f32 %v2705_v17 }
0x14dd   :  { %v4926_v38 = vpop.eup %3859 }
0x14de   :  { %v3862_v35 = vpop.eup %3861  ;;  %v2756_v29 = vmul.f32 %v4926_v38, %v2740_v33  ;;  %v2957_v33 = vld [vmem:[%s5045_s4 + $0x10] sm:$0xff] }
0x14df   :  { %v3864_v12 = vpop.eup %3863  ;;  %v2706_v15 = vadd.f32 1.0, %v3862_v35 }
0x14e0   :  { %v2707_v24 = vadd.f32 1.0, %v3864_v12  ;;  %v4930_v1 = vpop.eup %3865 }
0x14e1   :  { %3875 = vrcp.f32 %v2706_v15  ;;  %v4932_v36 = vpop.eup %3867  ;;  %v2757_v46 = vmul.f32 %v4930_v1, %v2741_v39 }
0x14e2   :  { %3877 = vrcp.f32 %v2707_v24  ;;  %v4937_v20 = vpop.eup %3869  ;;  %v2758_v45 = vmul.f32 %v4932_v36, %v2742_v50 }
0x14e3   :  { %v4940_v58 = vpop.eup %3871  ;;  %v2759_v9 = vmul.f32 %v4937_v20, %v2743_v28 }
0x14e4   :  { %v4945_v4 = vpop.eup %3873  ;;  %v2760_v26 = vmul.f32 %v4940_v58, %v2744_v48 }
0x14e5   :  { %v2761_v52 = vmul.f32 %v4945_v4, %v2745_v25 }
0x14eb   :  { %v4948_v57 = vpop.eup %3875 }
0x14ec   :  { %v4953_v23 = vpop.eup %3877 }
0x14ed   :  { %v2763_v15 = vmul.f32 %v4953_v23, %v2747_v40 }
0x153b   :  { %v2773_v37 = vpop.permute.xlu1 %2772 }
0x153c   :  { %v2796_v42 = vmul.f32 %v4926_v38, %v2773_v37  ;;  %v2775_v27 = vpop.permute.xlu0 %2774  ;;  %v2762_v37 = vmul.f32 %v4948_v57, %v2746_v16 }
0x153d   :  { %v2797_v44 = vmul.f32 %v4930_v1, %v2775_v27 }
0x153e   :  { %2812 = vrot.lane.b32.xlu1 %v2796_v42, %s3951_s30 }
0x153f   :  { %v2777_v55 = vpop.permute.xlu1 %2776  ;;  %2814 = vrot.lane.b32.xlu0 %v2797_v44, %s3951_s30 }
0x1540   :  { %v2798_v22 = vmul.f32 %v4932_v36, %v2777_v55  ;;  %v2779_v21 = vpop.permute.xlu0 %2778 }
0x1541   :  { %v2799_v62 = vmul.f32 %v4937_v20, %v2779_v21 }
0x1542   :  { %2816 = vrot.lane.b32.xlu1 %v2798_v22, %s3951_s30 }
0x1543   :  { %v2781_v19 = vpop.permute.xlu1 %2780  ;;  %2818 = vrot.lane.b32.xlu0 %v2799_v62, %s3951_s30 }
0x1544   :  { %v2800_v49 = vmul.f32 %v4940_v58, %v2781_v19  ;;  %v2783_v7 = vpop.permute.xlu0 %2782 }
0x1545   :  { %v2801_v31 = vmul.f32 %v4945_v4, %v2783_v7 }
0x1546   :  { %2820 = vrot.lane.b32.xlu1 %v2800_v49, %s3951_s30 }
0x1547   :  { %v2785_v54 = vpop.permute.xlu1 %2784  ;;  %2822 = vrot.lane.b32.xlu0 %v2801_v31, %s3951_s30 }
0x1548   :  { %v2802_v14 = vmul.f32 %v4948_v57, %v2785_v54  ;;  %v2787_v6 = vpop.permute.xlu0 %2786 }
0x1549   :  { %v2803_v30 = vmul.f32 %v4953_v23, %v2787_v6  ;;  %v2955_v6 = vld [vmem:[%s5045_s4] sm:$0xff] }
0x154a   :  { %2824 = vrot.lane.b32.xlu1 %v2802_v14, %s3951_s30 }
0x154b   :  { %2826 = vrot.lane.b32.xlu0 %v2803_v30, %s3951_s30  ;;  %v2956_v30 = vld [vmem:[%s5045_s4 + $0x8] sm:$0xff] }
0x15b0   :  { %v2813_v41 = vpop.permute.xlu1 %2812 }
0x15b1   :  { %v4960_v47 = vadd.f32 %v2813_v41, %v2756_v29  ;;  %v2815_v34 = vpop.permute.xlu0 %2814  ;;  %v3368_v29 = vpack.c.bf16 %v2956_v30, %v2955_v6  ;;  %v2958_v41 = vld [vmem:[%s5045_s4 + $0x18] sm:$0xff] }
0x15b2   :  { %v2837_v60 = vadd.f32 %v2815_v34, %v2757_v46  ;;  %v3371_v39 = vpack.c.bf16 %v2958_v41, %v2957_v33 }
0x15b3   :  { %3879 = vtanh.f32 %v4960_v47  ;;  %3369 = vmatpush3.bf16.msra.mxu0 %v3368_v29 }
0x15b4   :  { %v2817_v32 = vpop.permute.xlu1 %2816  ;;  %3881 = vtanh.f32 %v2837_v60  ;;  %v2931_v61 = vrot.slane %v2837_v60, 7  ;;  %3370 = vmatprep.subr.bf16.mxu0 %v3947_v0 }
0x15b5   :  { %v2838_v13 = vadd.f32 %v2817_v32, %v2758_v45  ;;  %v2819_v43 = vpop.permute.xlu0 %2818 }
0x15b6   :  { %v2839_v59 = vadd.f32 %v2819_v43, %v2759_v9 }
0x15b7   :  { %3883 = vtanh.f32 %v2838_v13  ;;  %v2932_v5 = vrot.slane %v2838_v13, 6  ;;  %3372 = vmatpush3.bf16.msra.mxu0 %v3371_v39 }
0x15b8   :  { %v2821_v18 = vpop.permute.xlu1 %2820  ;;  %3885 = vtanh.f32 %v2839_v59  ;;  %v2934_v11 = vrot.slane %v2839_v59, 5 }
0x15b9   :  { %v2933_v10 = vsel %vm542_vm3, %v2932_v5, %v2931_v61  ;;  %v2840_v63 = vadd.f32 %v2821_v18, %v2760_v26  ;;  %v2823_v2 = vpop.permute.xlu0 %2822 }
0x15ba   :  { %v2841_v51 = vadd.f32 %v2823_v2, %v2761_v52  ;;  %v2935_v35 = vsel %vm545_vm4, %v2934_v11, %v2933_v10 }
0x15bb   :  { %3887 = vtanh.f32 %v2840_v63  ;;  %v2936_v3 = vrot.slane %v2840_v63, 4 }
0x15bc   :  { %v2825_v42 = vpop.permute.xlu1 %2824  ;;  %3889 = vtanh.f32 %v2841_v51  ;;  %v2938_v12 = vrot.slane %v2841_v51, 3 }
0x15bd   :  { %v3880_v56 = vpop.eup %3879  ;;  %v2937_v8 = vsel %vm548_vm5, %v2936_v3, %v2935_v35  ;;  %v2842_v17 = vadd.f32 %v2825_v42, %v2762_v37  ;;  %v2827_v24 = vpop.permute.xlu0 %2826 }
0x15be   :  { %2860 = vrot.lane.b32.xlu1 %v3880_v56, %s3950_s3  ;;  %v3882_v44 = vpop.eup %3881  ;;  %v2843_v55 = vadd.f32 %v2827_v24, %v2763_v15  ;;  %v2939_v22 = vsel %vm551_vm6, %v2938_v12, %v2937_v8 }
0x15bf   :  { %3891 = vtanh.f32 %v2842_v17  ;;  %v2940_v27 = vrot.slane %v2842_v17, 2  ;;  %2862 = vrot.lane.b32.xlu0 %v3882_v44, %s3950_s3 }
0x15c0   :  { %3893 = vtanh.f32 %v2843_v55  ;;  %v2942_v62 = vrot.slane %v2843_v55, 1 }
0x15c1   :  { %v3884_v21 = vpop.eup %3883  ;;  %v2941_v53 = vsel %vm554_vm7, %v2940_v27, %v2939_v22  ;;  %v3143_v22 = vld [vmem:[%s5046_s5] ss:$0 sm:$0xff] }
0x15c2   :  { %2864 = vrot.lane.b32.xlu1 %v3884_v21, %s3950_s3  ;;  %v3886_v19 = vpop.eup %3885  ;;  %v4986_v49 = vsel %vm557_vm8, %v2942_v62, %v2941_v53 }
0x15c3   :  { %2866 = vrot.lane.b32.xlu0 %v3886_v19, %s3950_s3 }
0x15c5   :  { %v3888_v7 = vpop.eup %3887 }
0x15c6   :  { %2868 = vrot.lane.b32.xlu1 %v3888_v7, %s3950_s3  ;;  %v3890_v31 = vpop.eup %3889 }
0x15c7   :  { %2870 = vrot.lane.b32.xlu0 %v3890_v31, %s3950_s3 }
0x15c9   :  { %v3892_v54 = vpop.eup %3891 }
0x15ca   :  { %2872 = vrot.lane.b32.xlu1 %v3892_v54, %s3950_s3  ;;  %v3894_v14 = vpop.eup %3893 }
0x15cb   :  { %2874 = vrot.lane.b32.xlu0 %v3894_v14, %s3950_s3 }
0x1630   :  { %v2861_v50 = vpop.permute.xlu1 %2860 }
0x1631   :  { %v2884_v46 = vmul.f32 %v4926_v38, %v2861_v50  ;;  %v2863_v34 = vpop.permute.xlu0 %2862 }
0x1632   :  { %v2885_v45 = vmul.f32 %v4930_v1, %v2863_v34 }
0x1633   :  { %2913 = vrot.lane.b32.xlu0 %v2884_v46, %s3951_s30  ;;  %v2966_v28 = vrot.slane %v2884_v46, 7 }
0x1634   :  { %v2865_v60 = vpop.permute.xlu1 %2864  ;;  %v2967_v48 = vrot.slane %v2885_v45, 6  ;;  %v2900_v43 = vrot.slane %v2885_v45, 7 }
0x1635   :  { %v2886_v32 = vmul.f32 %v4932_v36, %v2865_v60  ;;  %v2867_v13 = vpop.permute.xlu0 %2866 }
0x1636   :  { %v2968_v38 = vsel %vm542_vm3, %v2967_v48, %v2966_v28  ;;  %v2887_v56 = vmul.f32 %v4937_v20, %v2867_v13 }
0x1637   :  { %2944 = vrot.lane.b32.xlu0 %v4960_v47, %s3952_s15  ;;  %v2901_v0 = vrot.slane %v2886_v32, 6  ;;  %v2969_v9 = vrot.slane %v2886_v32, 5 }
0x1638   :  { %v2869_v61 = vpop.permute.xlu1 %2868  ;;  %v2903_v26 = vrot.slane %v2887_v56, 5  ;;  %v2971_v1 = vrot.slane %v2887_v56, 4 }
0x1639   :  { %v2970_v5 = vsel %vm545_vm4, %v2969_v9, %v2968_v38  ;;  %v2888_v47 = vmul.f32 %v4940_v58, %v2869_v61  ;;  %v2902_v25 = vsel %vm542_vm3, %v2901_v0, %v2900_v43  ;;  %v2871_v59 = vpop.permute.xlu0 %2870 }
0x163a   :  { %v2889_v16 = vmul.f32 %v4945_v4, %v2871_v59  ;;  %v2972_v10 = vsel %vm548_vm5, %v2971_v1, %v2970_v5  ;;  %v2904_v58 = vsel %vm545_vm4, %v2903_v26, %v2902_v25 }
0x163b   :  { %v2905_v36 = vrot.slane %v2888_v47, 4  ;;  %v2973_v18 = vrot.slane %v2888_v47, 3 }
0x163c   :  { %v2873_v63 = vpop.permute.xlu1 %2872  ;;  %v2907_v52 = vrot.slane %v2889_v16, 3  ;;  %v2975_v2 = vrot.slane %v2889_v16, 2 }
0x163d   :  { %v2974_v20 = vsel %vm551_vm6, %v2973_v18, %v2972_v10  ;;  %v2890_v11 = vmul.f32 %v4948_v57, %v2873_v63  ;;  %v2906_v3 = vsel %vm548_vm5, %v2905_v36, %v2904_v58  ;;  %v2875_v37 = vpop.permute.xlu0 %2874 }
0x163e   :  { %v2891_v35 = vmul.f32 %v4953_v23, %v2875_v37  ;;  %v2976_v4 = vsel %vm554_vm7, %v2975_v2, %v2974_v20  ;;  %v2908_v57 = vsel %vm551_vm6, %v2907_v52, %v2906_v3 }
0x163f   :  { %v2909_v40 = vrot.slane %v2890_v11, 2  ;;  %v2977_v51 = vrot.slane %v2890_v11, 1 }
0x1640   :  { %v2911_v8 = vrot.slane %v2891_v35, 1 }
0x1641   :  { %v2978_v42 = vsel %vm557_vm8, %v2977_v51, %v2976_v4  ;;  %v2910_v12 = vsel %vm554_vm7, %v2909_v40, %v2908_v57 }
0x1642   :  { %v2979_v17 = vsel %vm560_vm9, %v2891_v35, %v2978_v42  ;;  %v2912_v15 = vsel %vm557_vm8, %v2911_v8, %v2910_v12 }
0x1643   :  { %2980 = vrot.lane.b32.xlu1 %v2979_v17, %s3951_s30 }
0x1647   :  { %2915 = vrot.lane.b32.xlu1 %v2912_v15, %s3951_s30 }
0x164b   :  { %2946 = vrot.lane.b32.xlu1 %v4986_v49, %s3952_s15 }
0x16a5   :  { %v2914_v23 = vpop.permute.xlu0 %2913 }
0x16a6   :  { %2920 = vst.msk [vmem:[#allocation2 - $0x7] sm:$0x80] %vm2919_vm10, %v2914_v23 }
0x16a9   :  { %v2945_v24 = vpop.permute.xlu0 %2944 }
0x16aa   :  { %2950 = vst.msk [vmem:[#allocation3 - $0x7] sm:$0x80] %vm2919_vm10, %v2945_v24 }
0x16b5   :  { %v2981_v27 = vpop.permute.xlu1 %2980 }
0x16b6   :  { %3313 = vmatmul.mubr.msk.f32.vlgmr.msra.gmra.mrb[14].mxu0 %vm55_vm1, %v2981_v27 }
0x16b9   :  { %v2916_v44 = vpop.permute.xlu1 %2915 }
0x16ba   :  { %2922 = vst.msk [vmem:[#allocation2 + $0x1] sm:$0x7f] %vm2921_vm11, %v2916_v44 }
0x16bd   :  { %v2947_v55 = vpop.permute.xlu1 %2946 }
0x16be   :  { %2951 = vst.msk [vmem:[#allocation3 + $0x1] sm:$0x7f] %vm2921_vm11, %v2947_v55 }
0x1789   :  { %v3050_v21 = vpop.f32.mrb[14].mxu0 }
0x178a   :  { %v3051_v53 = vadd.f32 %v3143_v22, %v3050_v21  ;;  %v3314_v62 = vpop.f32.mrb[15].mxu0 }
0x178c   :  { %3055 = vst.msk [vmem:[%s5047_s6] sm:$0xff] %vm3054_vm12, %v3051_v53 }
0x178d   :  { %3060 = vsyncpa [#allocation5], 1 }
0x178e   :  { %3061 = vsyncpa [#allocation7], 1 }

</bundles_post_ra>
